<compile_context>
chip_gen: v5e
topology: v5e:2x2
jax: 0.10.0
libtpu: 0.0.40
codegen_flags: <defaults>
</compile_context>

<pallas_src>
import jax
import jax.numpy as jnp
from jax import lax
from jax.experimental import pallas as pl
from jax.experimental.pallas import tpu as pltpu

# LaneGCN default config values (the "parameters" of this module).
CONFIG = {
    "num_mods": 6,
    "num_preds": 30,
    "cls_th": 2.0,
    "cls_ignore": 0.2,
    "mgn": 0.2,
    "cls_coef": 1.0,
    "reg_coef": 1.0,
}


def _round_up(x, m):
    return ((x + m - 1) // m) * m


def make_loss_kernel(config):
    num_mods = int(config["num_mods"])
    num_preds = int(config["num_preds"])
    cls_th = float(config["cls_th"])
    cls_ignore = float(config["cls_ignore"])
    mgn_th = float(config["mgn"])
    cls_coef = float(config["cls_coef"])
    reg_coef = float(config["reg_coef"])

    def _total(x):
        # Reduce a 2-D (rows, lanes) array to a (1, 1) array.
        return jnp.sum(jnp.sum(x, axis=1, keepdims=True), axis=0, keepdims=True)

    def smooth_l1(d):  # nn.SmoothL1Loss, beta = 1.0, per element
        a = jnp.abs(d)
        return jnp.where(a < 1.0, 0.5 * d * d, a - 0.5)

    def kernel(cls_ref, reg_ref, gt_ref, has_ref, out_ref):
        # cls_ref: (M, BN) f32 | reg_ref: (M, 2, T, BN) bf16
        # gt_ref:  (2, T, BN) bf16 | has_ref: (T, BN) int8
        cls = cls_ref[...]                                   # (M, BN) f32
        has_f = has_ref[...].astype(jnp.float32)             # (T, BN) in {0,1}
        has_b = has_f > 0.5

        # --- last valid timestep per actor (exact one-hot over T, all f32) ---
        t_iota = lax.broadcasted_iota(jnp.int32, has_f.shape, 0).astype(jnp.float32)
        last = has_f + 0.1 * t_iota / float(num_preds)
        max_last = jnp.max(last, axis=0, keepdims=True)       # (1, BN)
        row_valid = max_last > 1.0                            # (1, BN) bool
        onehot_t = (last == max_last).astype(jnp.float32)     # (T, BN)

        gtx = gt_ref[0].astype(jnp.float32)                   # (T, BN)
        gty = gt_ref[1].astype(jnp.float32)                   # (T, BN)
        gt_last_x = jnp.sum(gtx * onehot_t, axis=0, keepdims=True)   # (1, BN)
        gt_last_y = jnp.sum(gty * onehot_t, axis=0, keepdims=True)

        # --- running min of endpoint squared distance over modes -------------
        # Strict "<" keeps the FIRST minimal mode index (matches torch .min(1)).
        d2_list = []
        min_d2 = None
        first_idx = None
        for j in range(num_mods):
            rx = jnp.sum(reg_ref[j, 0].astype(jnp.float32) * onehot_t,
                         axis=0, keepdims=True)               # (1, BN)
            ry = jnp.sum(reg_ref[j, 1].astype(jnp.float32) * onehot_t,
                         axis=0, keepdims=True)
            dxj = rx - gt_last_x
            dyj = ry - gt_last_y
            d2 = dxj * dxj + dyj * dyj                        # (1, BN)
            d2_list.append(d2)
            if j == 0:
                min_d2 = d2
                first_idx = jnp.zeros_like(d2)
            else:
                better = d2 < min_d2
                first_idx = jnp.where(better, float(j), first_idx)
                min_d2 = jnp.where(better, d2, min_d2)

        min_dist = jnp.sqrt(min_d2)                           # single (1, BN) sqrt
        thr = min_dist + cls_ignore
        thr2 = thr * thr
        base_sel = row_valid & (min_dist < cls_th)            # (1, BN)

        # --- classification (max-margin) loss ---------------------------------
        m_iota = lax.broadcasted_iota(jnp.int32, cls.shape, 0).astype(jnp.float32)
        onehot_m = (m_iota == first_idx).astype(jnp.float32)  # (M, BN)
        cls_min = jnp.sum(cls * onehot_m, axis=0, keepdims=True)  # (1, BN)

        cls_sum = jnp.zeros_like(min_dist)
        num_cls_sum = jnp.zeros_like(min_dist)
        for j in range(num_mods):
            # (dist_j - min_dist) > cls_ignore  <=>  d2_j > (min_dist + ignore)^2
            sel_j = base_sel & (d2_list[j] > thr2)            # (1, BN)
            mgn_j = cls_min - cls[j:j + 1, :]                 # (1, BN)
            m_j = (sel_j & (mgn_j < mgn_th)).astype(jnp.float32)
            cls_sum = cls_sum + m_j * (mgn_th - mgn_j)
            num_cls_sum = num_cls_sum + m_j
        cls_partial = cls_coef * _total(cls_sum)              # (1, 1)
        num_cls_partial = _total(num_cls_sum)                 # (1, 1)

        # --- regression loss on the selected best mode (x, then y) ------------
        valid = (row_valid & has_b).astype(jnp.float32)       # (T, BN)
        num_reg_partial = _total(valid)                       # (1, 1)

        wjs = [(first_idx == float(j)).astype(jnp.float32) for j in range(num_mods)]

        selx = jnp.zeros_like(gtx)
        for j in range(num_mods):
            selx = selx + reg_ref[j, 0].astype(jnp.float32) * wjs[j]
        reg_sum = _total(smooth_l1(selx - gtx) * valid)

        sely = jnp.zeros_like(gty)
        for j in range(num_mods):
            sely = sely + reg_ref[j, 1].astype(jnp.float32) * wjs[j]
        reg_sum = reg_sum + _total(smooth_l1(sely - gty) * valid)
        reg_partial = reg_coef * reg_sum                      # (1, 1)

        # --- pack the four partial sums into lanes 0..3 of one dense store ----
        lane = lax.broadcasted_iota(jnp.int32, (1, 128), 1)
        packed = (jnp.where(lane == 0, cls_partial, 0.0)
                  + jnp.where(lane == 1, num_cls_partial, 0.0)
                  + jnp.where(lane == 2, reg_partial, 0.0)
                  + jnp.where(lane == 3, num_reg_partial, 0.0))
        out_ref[...] = packed.reshape(1, 1, 128)

    return kernel


def lanegcn_loss(out, data, config=CONFIG, block_n=2048):
    # --- glue (plain JAX): concat per-sample lists, single relayout per tensor
    cls = jnp.concatenate([jnp.asarray(x) for x in out["cls"]], 0).astype(jnp.float32)  # (N, M)
    reg = jnp.concatenate([jnp.asarray(x) for x in out["reg"]], 0)                      # (N, M, T, 2)
    gt = jnp.concatenate([jnp.asarray(x) for x in data["gt_preds"]], 0)                 # (N, T, 2)
    has = jnp.concatenate([jnp.asarray(x) for x in data["has_preds"]], 0)               # (N, T)

    N, M = cls.shape
    T = gt.shape[1]
    assert M == config["num_mods"] and T == config["num_preds"]

    # Actors (N) on the lane (minor) axis; reg/gt in bf16 (upcast in-kernel),
    # has as int8.  x/y merged so reg is read+written exactly once here.
    # TODO(synk): have the upstream model emit (M, 2, T, N) directly and delete
    # these transposes entirely.
    cls_t = cls.T                                                   # (M, N)      f32
    reg_t = jnp.transpose(reg.astype(jnp.bfloat16), (1, 3, 2, 0))   # (M, 2, T, N) bf16
    gt_t = jnp.transpose(gt.astype(jnp.bfloat16), (2, 1, 0))        # (2, T, N)   bf16
    has_t = has.astype(jnp.int8).T                                  # (T, N)      int8

    # Pad N to a multiple of the lane-block size; padded actors have has == 0
    # so the kernel masks them out.  Keep >= 2 blocks when possible so the
    # "parallel" grid axis can shard across both v7x TensorCores.
    n128 = _round_up(max(N, 1), 128)
    bn = min(int(block_n), n128)
    if bn == n128 and n128 >= 256:
        bn = _round_up(n128 // 2, 128)
    n_pad = _round_up(N, bn)
    pad = n_pad - N
    if pad:
        cls_t = jnp.pad(cls_t, ((0, 0), (0, pad)))
        reg_t = jnp.pad(reg_t, ((0, 0), (0, 0), (0, 0), (0, pad)))
        gt_t = jnp.pad(gt_t, ((0, 0), (0, 0), (0, pad)))
        has_t = jnp.pad(has_t, ((0, 0), (0, pad)))

    num_blocks = n_pad // bn
    kernel = make_loss_kernel(config)

    # Scoped-VMEM budget: ~2x block input bytes (double buffering) + headroom
    # for (T, bn) f32 temporaries; clamp to v7x's 64 MiB physical VMEM.
    block_in_bytes = (M * bn * 4            # cls  f32
                      + M * 2 * T * bn * 2  # reg  bf16
                      + 2 * T * bn * 2      # gt   bf16
                      + T * bn * 1)         # has  int8
    vmem_limit = int(min(64 << 20, max(32 << 20, 4 * block_in_bytes + (8 << 20))))

    bytes_accessed = (cls_t.size * 4 + reg_t.size * 2 + gt_t.size * 2
                      + has_t.size * 1 + num_blocks * 128 * 4)
    flops = n_pad * (M * T * 10 + T * 16 + M * 12)
    cost = pl.CostEstimate(flops=int(flops),
                           transcendentals=int(n_pad),
                           bytes_accessed=int(bytes_accessed))

    partials = pl.pallas_call(
        kernel,
        out_shape=jax.ShapeDtypeStruct((num_blocks, 1, 128), jnp.float32),
        grid=(num_blocks,),
        in_specs=[
            pl.BlockSpec((M, bn), lambda i: (0, i)),
            pl.BlockSpec((M, 2, T, bn), lambda i: (0, 0, 0, i)),
            pl.BlockSpec((2, T, bn), lambda i: (0, 0, i)),
            pl.BlockSpec((T, bn), lambda i: (0, i)),
        ],
        out_specs=pl.BlockSpec((1, 1, 128), lambda i: (i, 0, 0)),
        compiler_params=pltpu.CompilerParams(
            dimension_semantics=("parallel",),
            vmem_limit_bytes=vmem_limit),
        cost_estimate=cost,
    )(cls_t, reg_t, gt_t, has_t)

    # Finalize: sum per-block partials in JAX (keeps the grid "parallel").
    sums = jnp.sum(partials, axis=(0, 1))   # (128,)
    cls_loss = sums[0]
    num_cls = sums[1]
    reg_loss = sums[2]
    num_reg = sums[3]
    loss = cls_loss / (num_cls + 1e-10) + reg_loss / (num_reg + 1e-10)
    # TODO(synk): pallas_call has no autodiff rule; a custom VJP is needed if
    # this loss must be differentiated for training.
    return {
        "cls_loss": cls_loss,
        "num_cls": num_cls,
        "reg_loss": reg_loss,
        "num_reg": num_reg,
        "loss": loss,
    }


if __name__ == "__main__":
    key = jax.random.PRNGKey(0)
    num_mods, num_preds = CONFIG["num_mods"], CONFIG["num_preds"]

    # Two "samples" of 4 actors each (the module concatenates these lists).
    batches = [4, 4]
    cls_list, reg_list, gt_list, has_list = [], [], [], []
    for n in batches:
        key, k1, k2, k3, k4 = jax.random.split(key, 5)
        cls_list.append(jax.random.normal(k1, (n, num_mods), jnp.float32))
        reg_list.append(1.5 * jax.random.normal(k2, (n, num_mods, num_preds, 2),
                                                jnp.float32))
        gt_list.append(1.5 * jax.random.normal(k3, (n, num_preds, 2), jnp.float32))
        has_list.append(jax.random.uniform(k4, (n, num_preds)) < 0.8)

    out = {"cls": cls_list, "reg": reg_list}
    data = {"gt_preds": gt_list, "has_preds": has_list}

    result = lanegcn_loss(out, data)
    jax.block_until_ready(result["loss"])
    print("KERNEL_OK")
</pallas_src>

<mosaic_0001>
module attributes {stable_mosaic.version = 11 : i64} {
  func.func @kernel(%arg0: i32, %arg1: memref<6x128xf32, #tpu.memory_space<vmem>>, %arg2: memref<6x2x30x128xbf16, #tpu.memory_space<vmem>>, %arg3: memref<2x30x128xbf16, #tpu.memory_space<vmem>>, %arg4: memref<30x128xi8, #tpu.memory_space<vmem>>, %arg5: memref<1x1x128xf32, #tpu.memory_space<vmem>>) attributes {dimension_semantics = [#tpu.dimension_semantics<parallel>], iteration_bounds = array<i64: 1>, scalar_prefetch = 0 : i64, scratch_operands = 0 : i64, tpu.core_type = #tpu.core_type<tc>, window_params = [{transform_indices = @transform_0, window_bounds = array<i64: 6, 128>}, {transform_indices = @transform_1, window_bounds = array<i64: 6, 2, 30, 128>}, {transform_indices = @transform_2, window_bounds = array<i64: 2, 30, 128>}, {transform_indices = @transform_3, window_bounds = array<i64: 30, 128>}, {transform_indices = @transform_4, window_bounds = array<i64: 1, 1, 128>}]} {
    %c0 = arith.constant 0 : index
    %c0_0 = arith.constant 0 : index
    %0 = vector.load %arg1[%c0, %c0_0] : memref<6x128xf32, #tpu.memory_space<vmem>>, vector<6x128xf32>
    %c0_1 = arith.constant 0 : index
    %c0_2 = arith.constant 0 : index
    %1 = vector.load %arg4[%c0_1, %c0_2] : memref<30x128xi8, #tpu.memory_space<vmem>>, vector<30x128xi8>
    %2 = arith.sitofp %1 : vector<30x128xi8> to vector<30x128xf32>
    %cst = arith.constant 5.000000e-01 : f32
    %3 = vector.broadcast %cst : f32 to vector<30x128xf32>
    %4 = arith.cmpf ogt, %2, %3 : vector<30x128xf32>
    %5 = tpu.iota {dimensions = array<i32: 0>} : vector<30x128xi32>
    %6 = arith.sitofp %5 : vector<30x128xi32> to vector<30x128xf32>
    %cst_3 = arith.constant 1.000000e-01 : f32
    %7 = vector.broadcast %cst_3 : f32 to vector<30x128xf32>
    %8 = arith.mulf %7, %6 : vector<30x128xf32>
    %cst_4 = arith.constant 3.000000e+01 : f32
    %9 = vector.broadcast %cst_4 : f32 to vector<30x128xf32>
    %10 = arith.divf %8, %9 : vector<30x128xf32>
    %11 = arith.addf %2, %10 : vector<30x128xf32>
    %cst_5 = arith.constant dense<0xFF800000> : vector<128xf32>
    %12 = vector.multi_reduction <maximumf>, %11, %cst_5 [0] : vector<30x128xf32> to vector<128xf32>
    %13 = vector.shape_cast %12 : vector<128xf32> to vector<1x128xf32>
    %cst_6 = arith.constant 1.000000e+00 : f32
    %14 = vector.broadcast %cst_6 : f32 to vector<1x128xf32>
    %15 = arith.cmpf ogt, %13, %14 : vector<1x128xf32>
    %16 = vector.broadcast %13 : vector<1x128xf32> to vector<30x128xf32>
    %17 = arith.cmpf oeq, %11, %16 : vector<30x128xf32>
    %18 = arith.extui %17 : vector<30x128xi1> to vector<30x128xi32>
    %19 = arith.sitofp %18 : vector<30x128xi32> to vector<30x128xf32>
    %c0_7 = arith.constant 0 : index
    %c0_8 = arith.constant 0 : index
    %c0_9 = arith.constant 0 : index
    %20 = vector.load %arg3[%c0_7, %c0_8, %c0_9] : memref<2x30x128xbf16, #tpu.memory_space<vmem>>, vector<1x30x128xbf16>
    %21 = vector.shape_cast %20 : vector<1x30x128xbf16> to vector<30x128xbf16>
    %22 = arith.extf %21 : vector<30x128xbf16> to vector<30x128xf32>
    %c1 = arith.constant 1 : index
    %c0_10 = arith.constant 0 : index
    %c0_11 = arith.constant 0 : index
    %23 = vector.load %arg3[%c1, %c0_10, %c0_11] : memref<2x30x128xbf16, #tpu.memory_space<vmem>>, vector<1x30x128xbf16>
    %24 = vector.shape_cast %23 : vector<1x30x128xbf16> to vector<30x128xbf16>
    %25 = arith.extf %24 : vector<30x128xbf16> to vector<30x128xf32>
    %26 = arith.mulf %22, %19 : vector<30x128xf32>
    %cst_12 = arith.constant dense<0.000000e+00> : vector<128xf32>
    %27 = vector.multi_reduction <add>, %26, %cst_12 [0] : vector<30x128xf32> to vector<128xf32>
    %28 = vector.shape_cast %27 : vector<128xf32> to vector<1x128xf32>
    %29 = arith.mulf %25, %19 : vector<30x128xf32>
    %cst_13 = arith.constant dense<0.000000e+00> : vector<128xf32>
    %30 = vector.multi_reduction <add>, %29, %cst_13 [0] : vector<30x128xf32> to vector<128xf32>
    %31 = vector.shape_cast %30 : vector<128xf32> to vector<1x128xf32>
    %c0_14 = arith.constant 0 : index
    %c0_15 = arith.constant 0 : index
    %c0_16 = arith.constant 0 : index
    %c0_17 = arith.constant 0 : index
    %32 = vector.load %arg2[%c0_14, %c0_15, %c0_16, %c0_17] : memref<6x2x30x128xbf16, #tpu.memory_space<vmem>>, vector<1x1x30x128xbf16>
    %33 = vector.shape_cast %32 : vector<1x1x30x128xbf16> to vector<30x128xbf16>
    %34 = arith.extf %33 : vector<30x128xbf16> to vector<30x128xf32>
    %35 = arith.mulf %34, %19 : vector<30x128xf32>
    %cst_18 = arith.constant dense<0.000000e+00> : vector<128xf32>
    %36 = vector.multi_reduction <add>, %35, %cst_18 [0] : vector<30x128xf32> to vector<128xf32>
    %37 = vector.shape_cast %36 : vector<128xf32> to vector<1x128xf32>
    %c0_19 = arith.constant 0 : index
    %c1_20 = arith.constant 1 : index
    %c0_21 = arith.constant 0 : index
    %c0_22 = arith.constant 0 : index
    %38 = vector.load %arg2[%c0_19, %c1_20, %c0_21, %c0_22] : memref<6x2x30x128xbf16, #tpu.memory_space<vmem>>, vector<1x1x30x128xbf16>
    %39 = vector.shape_cast %38 : vector<1x1x30x128xbf16> to vector<30x128xbf16>
    %40 = arith.extf %39 : vector<30x128xbf16> to vector<30x128xf32>
    %41 = arith.mulf %40, %19 : vector<30x128xf32>
    %cst_23 = arith.constant dense<0.000000e+00> : vector<128xf32>
    %42 = vector.multi_reduction <add>, %41, %cst_23 [0] : vector<30x128xf32> to vector<128xf32>
    %43 = vector.shape_cast %42 : vector<128xf32> to vector<1x128xf32>
    %44 = arith.subf %37, %28 : vector<1x128xf32>
    %45 = arith.subf %43, %31 : vector<1x128xf32>
    %46 = arith.mulf %44, %44 : vector<1x128xf32>
    %47 = arith.mulf %45, %45 : vector<1x128xf32>
    %48 = arith.addf %46, %47 : vector<1x128xf32>
    %cst_24 = arith.constant 0.000000e+00 : f32
    %49 = vector.broadcast %cst_24 : f32 to vector<1x128xf32>
    %c1_25 = arith.constant 1 : index
    %c0_26 = arith.constant 0 : index
    %c0_27 = arith.constant 0 : index
    %c0_28 = arith.constant 0 : index
    %50 = vector.load %arg2[%c1_25, %c0_26, %c0_27, %c0_28] : memref<6x2x30x128xbf16, #tpu.memory_space<vmem>>, vector<1x1x30x128xbf16>
    %51 = vector.shape_cast %50 : vector<1x1x30x128xbf16> to vector<30x128xbf16>
    %52 = arith.extf %51 : vector<30x128xbf16> to vector<30x128xf32>
    %53 = arith.mulf %52, %19 : vector<30x128xf32>
    %cst_29 = arith.constant dense<0.000000e+00> : vector<128xf32>
    %54 = vector.multi_reduction <add>, %53, %cst_29 [0] : vector<30x128xf32> to vector<128xf32>
    %55 = vector.shape_cast %54 : vector<128xf32> to vector<1x128xf32>
    %c1_30 = arith.constant 1 : index
    %c1_31 = arith.constant 1 : index
    %c0_32 = arith.constant 0 : index
    %c0_33 = arith.constant 0 : index
    %56 = vector.load %arg2[%c1_30, %c1_31, %c0_32, %c0_33] : memref<6x2x30x128xbf16, #tpu.memory_space<vmem>>, vector<1x1x30x128xbf16>
    %57 = vector.shape_cast %56 : vector<1x1x30x128xbf16> to vector<30x128xbf16>
    %58 = arith.extf %57 : vector<30x128xbf16> to vector<30x128xf32>
    %59 = arith.mulf %58, %19 : vector<30x128xf32>
    %cst_34 = arith.constant dense<0.000000e+00> : vector<128xf32>
    %60 = vector.multi_reduction <add>, %59, %cst_34 [0] : vector<30x128xf32> to vector<128xf32>
    %61 = vector.shape_cast %60 : vector<128xf32> to vector<1x128xf32>
    %62 = arith.subf %55, %28 : vector<1x128xf32>
    %63 = arith.subf %61, %31 : vector<1x128xf32>
    %64 = arith.mulf %62, %62 : vector<1x128xf32>
    %65 = arith.mulf %63, %63 : vector<1x128xf32>
    %66 = arith.addf %64, %65 : vector<1x128xf32>
    %67 = arith.cmpf olt, %66, %48 : vector<1x128xf32>
    %cst_35 = arith.constant 1.000000e+00 : f32
    %68 = vector.broadcast %cst_35 : f32 to vector<1x128xf32>
    %69 = arith.select %67, %68, %49 : vector<1x128xi1>, vector<1x128xf32>
    %70 = arith.select %67, %66, %48 : vector<1x128xi1>, vector<1x128xf32>
    %c2 = arith.constant 2 : index
    %c0_36 = arith.constant 0 : index
    %c0_37 = arith.constant 0 : index
    %c0_38 = arith.constant 0 : index
    %71 = vector.load %arg2[%c2, %c0_36, %c0_37, %c0_38] : memref<6x2x30x128xbf16, #tpu.memory_space<vmem>>, vector<1x1x30x128xbf16>
    %72 = vector.shape_cast %71 : vector<1x1x30x128xbf16> to vector<30x128xbf16>
    %73 = arith.extf %72 : vector<30x128xbf16> to vector<30x128xf32>
    %74 = arith.mulf %73, %19 : vector<30x128xf32>
    %cst_39 = arith.constant dense<0.000000e+00> : vector<128xf32>
    %75 = vector.multi_reduction <add>, %74, %cst_39 [0] : vector<30x128xf32> to vector<128xf32>
    %76 = vector.shape_cast %75 : vector<128xf32> to vector<1x128xf32>
    %c2_40 = arith.constant 2 : index
    %c1_41 = arith.constant 1 : index
    %c0_42 = arith.constant 0 : index
    %c0_43 = arith.constant 0 : index
    %77 = vector.load %arg2[%c2_40, %c1_41, %c0_42, %c0_43] : memref<6x2x30x128xbf16, #tpu.memory_space<vmem>>, vector<1x1x30x128xbf16>
    %78 = vector.shape_cast %77 : vector<1x1x30x128xbf16> to vector<30x128xbf16>
    %79 = arith.extf %78 : vector<30x128xbf16> to vector<30x128xf32>
    %80 = arith.mulf %79, %19 : vector<30x128xf32>
    %cst_44 = arith.constant dense<0.000000e+00> : vector<128xf32>
    %81 = vector.multi_reduction <add>, %80, %cst_44 [0] : vector<30x128xf32> to vector<128xf32>
    %82 = vector.shape_cast %81 : vector<128xf32> to vector<1x128xf32>
    %83 = arith.subf %76, %28 : vector<1x128xf32>
    %84 = arith.subf %82, %31 : vector<1x128xf32>
    %85 = arith.mulf %83, %83 : vector<1x128xf32>
    %86 = arith.mulf %84, %84 : vector<1x128xf32>
    %87 = arith.addf %85, %86 : vector<1x128xf32>
    %88 = arith.cmpf olt, %87, %70 : vector<1x128xf32>
    %cst_45 = arith.constant 2.000000e+00 : f32
    %89 = vector.broadcast %cst_45 : f32 to vector<1x128xf32>
    %90 = arith.select %88, %89, %69 : vector<1x128xi1>, vector<1x128xf32>
    %91 = arith.select %88, %87, %70 : vector<1x128xi1>, vector<1x128xf32>
    %c3 = arith.constant 3 : index
    %c0_46 = arith.constant 0 : index
    %c0_47 = arith.constant 0 : index
    %c0_48 = arith.constant 0 : index
    %92 = vector.load %arg2[%c3, %c0_46, %c0_47, %c0_48] : memref<6x2x30x128xbf16, #tpu.memory_space<vmem>>, vector<1x1x30x128xbf16>
    %93 = vector.shape_cast %92 : vector<1x1x30x128xbf16> to vector<30x128xbf16>
    %94 = arith.extf %93 : vector<30x128xbf16> to vector<30x128xf32>
    %95 = arith.mulf %94, %19 : vector<30x128xf32>
    %cst_49 = arith.constant dense<0.000000e+00> : vector<128xf32>
    %96 = vector.multi_reduction <add>, %95, %cst_49 [0] : vector<30x128xf32> to vector<128xf32>
    %97 = vector.shape_cast %96 : vector<128xf32> to vector<1x128xf32>
    %c3_50 = arith.constant 3 : index
    %c1_51 = arith.constant 1 : index
    %c0_52 = arith.constant 0 : index
    %c0_53 = arith.constant 0 : index
    %98 = vector.load %arg2[%c3_50, %c1_51, %c0_52, %c0_53] : memref<6x2x30x128xbf16, #tpu.memory_space<vmem>>, vector<1x1x30x128xbf16>
    %99 = vector.shape_cast %98 : vector<1x1x30x128xbf16> to vector<30x128xbf16>
    %100 = arith.extf %99 : vector<30x128xbf16> to vector<30x128xf32>
    %101 = arith.mulf %100, %19 : vector<30x128xf32>
    %cst_54 = arith.constant dense<0.000000e+00> : vector<128xf32>
    %102 = vector.multi_reduction <add>, %101, %cst_54 [0] : vector<30x128xf32> to vector<128xf32>
    %103 = vector.shape_cast %102 : vector<128xf32> to vector<1x128xf32>
    %104 = arith.subf %97, %28 : vector<1x128xf32>
    %105 = arith.subf %103, %31 : vector<1x128xf32>
    %106 = arith.mulf %104, %104 : vector<1x128xf32>
    %107 = arith.mulf %105, %105 : vector<1x128xf32>
    %108 = arith.addf %106, %107 : vector<1x128xf32>
    %109 = arith.cmpf olt, %108, %91 : vector<1x128xf32>
    %cst_55 = arith.constant 3.000000e+00 : f32
    %110 = vector.broadcast %cst_55 : f32 to vector<1x128xf32>
    %111 = arith.select %109, %110, %90 : vector<1x128xi1>, vector<1x128xf32>
    %112 = arith.select %109, %108, %91 : vector<1x128xi1>, vector<1x128xf32>
    %c4 = arith.constant 4 : index
    %c0_56 = arith.constant 0 : index
    %c0_57 = arith.constant 0 : index
    %c0_58 = arith.constant 0 : index
    %113 = vector.load %arg2[%c4, %c0_56, %c0_57, %c0_58] : memref<6x2x30x128xbf16, #tpu.memory_space<vmem>>, vector<1x1x30x128xbf16>
    %114 = vector.shape_cast %113 : vector<1x1x30x128xbf16> to vector<30x128xbf16>
    %115 = arith.extf %114 : vector<30x128xbf16> to vector<30x128xf32>
    %116 = arith.mulf %115, %19 : vector<30x128xf32>
    %cst_59 = arith.constant dense<0.000000e+00> : vector<128xf32>
    %117 = vector.multi_reduction <add>, %116, %cst_59 [0] : vector<30x128xf32> to vector<128xf32>
    %118 = vector.shape_cast %117 : vector<128xf32> to vector<1x128xf32>
    %c4_60 = arith.constant 4 : index
    %c1_61 = arith.constant 1 : index
    %c0_62 = arith.constant 0 : index
    %c0_63 = arith.constant 0 : index
    %119 = vector.load %arg2[%c4_60, %c1_61, %c0_62, %c0_63] : memref<6x2x30x128xbf16, #tpu.memory_space<vmem>>, vector<1x1x30x128xbf16>
    %120 = vector.shape_cast %119 : vector<1x1x30x128xbf16> to vector<30x128xbf16>
    %121 = arith.extf %120 : vector<30x128xbf16> to vector<30x128xf32>
    %122 = arith.mulf %121, %19 : vector<30x128xf32>
    %cst_64 = arith.constant dense<0.000000e+00> : vector<128xf32>
    %123 = vector.multi_reduction <add>, %122, %cst_64 [0] : vector<30x128xf32> to vector<128xf32>
    %124 = vector.shape_cast %123 : vector<128xf32> to vector<1x128xf32>
    %125 = arith.subf %118, %28 : vector<1x128xf32>
    %126 = arith.subf %124, %31 : vector<1x128xf32>
    %127 = arith.mulf %125, %125 : vector<1x128xf32>
    %128 = arith.mulf %126, %126 : vector<1x128xf32>
    %129 = arith.addf %127, %128 : vector<1x128xf32>
    %130 = arith.cmpf olt, %129, %112 : vector<1x128xf32>
    %cst_65 = arith.constant 4.000000e+00 : f32
    %131 = vector.broadcast %cst_65 : f32 to vector<1x128xf32>
    %132 = arith.select %130, %131, %111 : vector<1x128xi1>, vector<1x128xf32>
    %133 = arith.select %130, %129, %112 : vector<1x128xi1>, vector<1x128xf32>
    %c5 = arith.constant 5 : index
    %c0_66 = arith.constant 0 : index
    %c0_67 = arith.constant 0 : index
    %c0_68 = arith.constant 0 : index
    %134 = vector.load %arg2[%c5, %c0_66, %c0_67, %c0_68] : memref<6x2x30x128xbf16, #tpu.memory_space<vmem>>, vector<1x1x30x128xbf16>
    %135 = vector.shape_cast %134 : vector<1x1x30x128xbf16> to vector<30x128xbf16>
    %136 = arith.extf %135 : vector<30x128xbf16> to vector<30x128xf32>
    %137 = arith.mulf %136, %19 : vector<30x128xf32>
    %cst_69 = arith.constant dense<0.000000e+00> : vector<128xf32>
    %138 = vector.multi_reduction <add>, %137, %cst_69 [0] : vector<30x128xf32> to vector<128xf32>
    %139 = vector.shape_cast %138 : vector<128xf32> to vector<1x128xf32>
    %c5_70 = arith.constant 5 : index
    %c1_71 = arith.constant 1 : index
    %c0_72 = arith.constant 0 : index
    %c0_73 = arith.constant 0 : index
    %140 = vector.load %arg2[%c5_70, %c1_71, %c0_72, %c0_73] : memref<6x2x30x128xbf16, #tpu.memory_space<vmem>>, vector<1x1x30x128xbf16>
    %141 = vector.shape_cast %140 : vector<1x1x30x128xbf16> to vector<30x128xbf16>
    %142 = arith.extf %141 : vector<30x128xbf16> to vector<30x128xf32>
    %143 = arith.mulf %142, %19 : vector<30x128xf32>
    %cst_74 = arith.constant dense<0.000000e+00> : vector<128xf32>
    %144 = vector.multi_reduction <add>, %143, %cst_74 [0] : vector<30x128xf32> to vector<128xf32>
    %145 = vector.shape_cast %144 : vector<128xf32> to vector<1x128xf32>
    %146 = arith.subf %139, %28 : vector<1x128xf32>
    %147 = arith.subf %145, %31 : vector<1x128xf32>
    %148 = arith.mulf %146, %146 : vector<1x128xf32>
    %149 = arith.mulf %147, %147 : vector<1x128xf32>
    %150 = arith.addf %148, %149 : vector<1x128xf32>
    %151 = arith.cmpf olt, %150, %133 : vector<1x128xf32>
    %cst_75 = arith.constant 5.000000e+00 : f32
    %152 = vector.broadcast %cst_75 : f32 to vector<1x128xf32>
    %153 = arith.select %151, %152, %132 : vector<1x128xi1>, vector<1x128xf32>
    %154 = arith.select %151, %150, %133 : vector<1x128xi1>, vector<1x128xf32>
    %155 = math.sqrt %154 : vector<1x128xf32>
    %cst_76 = arith.constant 2.000000e-01 : f32
    %156 = vector.broadcast %cst_76 : f32 to vector<1x128xf32>
    %157 = arith.addf %155, %156 : vector<1x128xf32>
    %158 = arith.mulf %157, %157 : vector<1x128xf32>
    %cst_77 = arith.constant 2.000000e+00 : f32
    %159 = vector.broadcast %cst_77 : f32 to vector<1x128xf32>
    %160 = arith.cmpf olt, %155, %159 : vector<1x128xf32>
    %161 = arith.andi %15, %160 : vector<1x128xi1>
    %162 = tpu.iota {dimensions = array<i32: 0>} : vector<6x128xi32>
    %163 = arith.sitofp %162 : vector<6x128xi32> to vector<6x128xf32>
    %164 = vector.broadcast %153 : vector<1x128xf32> to vector<6x128xf32>
    %165 = arith.cmpf oeq, %163, %164 : vector<6x128xf32>
    %166 = arith.extui %165 : vector<6x128xi1> to vector<6x128xi32>
    %167 = arith.sitofp %166 : vector<6x128xi32> to vector<6x128xf32>
    %168 = arith.mulf %0, %167 : vector<6x128xf32>
    %cst_78 = arith.constant dense<0.000000e+00> : vector<128xf32>
    %169 = vector.multi_reduction <add>, %168, %cst_78 [0] : vector<6x128xf32> to vector<128xf32>
    %170 = vector.shape_cast %169 : vector<128xf32> to vector<1x128xf32>
    %cst_79 = arith.constant 0.000000e+00 : f32
    %171 = vector.broadcast %cst_79 : f32 to vector<1x128xf32>
    %cst_80 = arith.constant 0.000000e+00 : f32
    %172 = vector.broadcast %cst_80 : f32 to vector<1x128xf32>
    %173 = arith.cmpf ogt, %48, %158 : vector<1x128xf32>
    %174 = arith.andi %161, %173 : vector<1x128xi1>
    %175 = vector.extract_strided_slice %0 {offsets = [0, 0], sizes = [1, 128], strides = [1, 1]} : vector<6x128xf32> to vector<1x128xf32>
    %176 = arith.subf %170, %175 : vector<1x128xf32>
    %cst_81 = arith.constant 2.000000e-01 : f32
    %177 = vector.broadcast %cst_81 : f32 to vector<1x128xf32>
    %178 = arith.cmpf olt, %176, %177 : vector<1x128xf32>
    %179 = arith.andi %174, %178 : vector<1x128xi1>
    %180 = arith.extui %179 : vector<1x128xi1> to vector<1x128xi32>
    %181 = arith.sitofp %180 : vector<1x128xi32> to vector<1x128xf32>
    %cst_82 = arith.constant 2.000000e-01 : f32
    %182 = vector.broadcast %cst_82 : f32 to vector<1x128xf32>
    %183 = arith.subf %182, %176 : vector<1x128xf32>
    %184 = arith.mulf %181, %183 : vector<1x128xf32>
    %185 = arith.addf %171, %184 : vector<1x128xf32>
    %186 = arith.addf %172, %181 : vector<1x128xf32>
    %187 = arith.cmpf ogt, %66, %158 : vector<1x128xf32>
    %188 = arith.andi %161, %187 : vector<1x128xi1>
    %189 = vector.extract_strided_slice %0 {offsets = [1, 0], sizes = [1, 128], strides = [1, 1]} : vector<6x128xf32> to vector<1x128xf32>
    %190 = arith.subf %170, %189 : vector<1x128xf32>
    %cst_83 = arith.constant 2.000000e-01 : f32
    %191 = vector.broadcast %cst_83 : f32 to vector<1x128xf32>
    %192 = arith.cmpf olt, %190, %191 : vector<1x128xf32>
    %193 = arith.andi %188, %192 : vector<1x128xi1>
    %194 = arith.extui %193 : vector<1x128xi1> to vector<1x128xi32>
    %195 = arith.sitofp %194 : vector<1x128xi32> to vector<1x128xf32>
    %cst_84 = arith.constant 2.000000e-01 : f32
    %196 = vector.broadcast %cst_84 : f32 to vector<1x128xf32>
    %197 = arith.subf %196, %190 : vector<1x128xf32>
    %198 = arith.mulf %195, %197 : vector<1x128xf32>
    %199 = arith.addf %185, %198 : vector<1x128xf32>
    %200 = arith.addf %186, %195 : vector<1x128xf32>
    %201 = arith.cmpf ogt, %87, %158 : vector<1x128xf32>
    %202 = arith.andi %161, %201 : vector<1x128xi1>
    %203 = vector.extract_strided_slice %0 {offsets = [2, 0], sizes = [1, 128], strides = [1, 1]} : vector<6x128xf32> to vector<1x128xf32>
    %204 = arith.subf %170, %203 : vector<1x128xf32>
    %cst_85 = arith.constant 2.000000e-01 : f32
    %205 = vector.broadcast %cst_85 : f32 to vector<1x128xf32>
    %206 = arith.cmpf olt, %204, %205 : vector<1x128xf32>
    %207 = arith.andi %202, %206 : vector<1x128xi1>
    %208 = arith.extui %207 : vector<1x128xi1> to vector<1x128xi32>
    %209 = arith.sitofp %208 : vector<1x128xi32> to vector<1x128xf32>
    %cst_86 = arith.constant 2.000000e-01 : f32
    %210 = vector.broadcast %cst_86 : f32 to vector<1x128xf32>
    %211 = arith.subf %210, %204 : vector<1x128xf32>
    %212 = arith.mulf %209, %211 : vector<1x128xf32>
    %213 = arith.addf %199, %212 : vector<1x128xf32>
    %214 = arith.addf %200, %209 : vector<1x128xf32>
    %215 = arith.cmpf ogt, %108, %158 : vector<1x128xf32>
    %216 = arith.andi %161, %215 : vector<1x128xi1>
    %217 = vector.extract_strided_slice %0 {offsets = [3, 0], sizes = [1, 128], strides = [1, 1]} : vector<6x128xf32> to vector<1x128xf32>
    %218 = arith.subf %170, %217 : vector<1x128xf32>
    %cst_87 = arith.constant 2.000000e-01 : f32
    %219 = vector.broadcast %cst_87 : f32 to vector<1x128xf32>
    %220 = arith.cmpf olt, %218, %219 : vector<1x128xf32>
    %221 = arith.andi %216, %220 : vector<1x128xi1>
    %222 = arith.extui %221 : vector<1x128xi1> to vector<1x128xi32>
    %223 = arith.sitofp %222 : vector<1x128xi32> to vector<1x128xf32>
    %cst_88 = arith.constant 2.000000e-01 : f32
    %224 = vector.broadcast %cst_88 : f32 to vector<1x128xf32>
    %225 = arith.subf %224, %218 : vector<1x128xf32>
    %226 = arith.mulf %223, %225 : vector<1x128xf32>
    %227 = arith.addf %213, %226 : vector<1x128xf32>
    %228 = arith.addf %214, %223 : vector<1x128xf32>
    %229 = arith.cmpf ogt, %129, %158 : vector<1x128xf32>
    %230 = arith.andi %161, %229 : vector<1x128xi1>
    %231 = vector.extract_strided_slice %0 {offsets = [4, 0], sizes = [1, 128], strides = [1, 1]} : vector<6x128xf32> to vector<1x128xf32>
    %232 = arith.subf %170, %231 : vector<1x128xf32>
    %cst_89 = arith.constant 2.000000e-01 : f32
    %233 = vector.broadcast %cst_89 : f32 to vector<1x128xf32>
    %234 = arith.cmpf olt, %232, %233 : vector<1x128xf32>
    %235 = arith.andi %230, %234 : vector<1x128xi1>
    %236 = arith.extui %235 : vector<1x128xi1> to vector<1x128xi32>
    %237 = arith.sitofp %236 : vector<1x128xi32> to vector<1x128xf32>
    %cst_90 = arith.constant 2.000000e-01 : f32
    %238 = vector.broadcast %cst_90 : f32 to vector<1x128xf32>
    %239 = arith.subf %238, %232 : vector<1x128xf32>
    %240 = arith.mulf %237, %239 : vector<1x128xf32>
    %241 = arith.addf %227, %240 : vector<1x128xf32>
    %242 = arith.addf %228, %237 : vector<1x128xf32>
    %243 = arith.cmpf ogt, %150, %158 : vector<1x128xf32>
    %244 = arith.andi %161, %243 : vector<1x128xi1>
    %245 = vector.extract_strided_slice %0 {offsets = [5, 0], sizes = [1, 128], strides = [1, 1]} : vector<6x128xf32> to vector<1x128xf32>
    %246 = arith.subf %170, %245 : vector<1x128xf32>
    %cst_91 = arith.constant 2.000000e-01 : f32
    %247 = vector.broadcast %cst_91 : f32 to vector<1x128xf32>
    %248 = arith.cmpf olt, %246, %247 : vector<1x128xf32>
    %249 = arith.andi %244, %248 : vector<1x128xi1>
    %250 = arith.extui %249 : vector<1x128xi1> to vector<1x128xi32>
    %251 = arith.sitofp %250 : vector<1x128xi32> to vector<1x128xf32>
    %cst_92 = arith.constant 2.000000e-01 : f32
    %252 = vector.broadcast %cst_92 : f32 to vector<1x128xf32>
    %253 = arith.subf %252, %246 : vector<1x128xf32>
    %254 = arith.mulf %251, %253 : vector<1x128xf32>
    %255 = arith.addf %241, %254 : vector<1x128xf32>
    %256 = arith.addf %242, %251 : vector<1x128xf32>
    %cst_93 = arith.constant dense<0.000000e+00> : vector<1xf32>
    %257 = vector.multi_reduction <add>, %255, %cst_93 [1] : vector<1x128xf32> to vector<1xf32>
    %258 = vector.shape_cast %257 : vector<1xf32> to vector<1x1xf32>
    %cst_94 = arith.constant dense<0.000000e+00> : vector<1xf32>
    %259 = vector.multi_reduction <add>, %258, %cst_94 [0] : vector<1x1xf32> to vector<1xf32>
    %260 = vector.shape_cast %259 : vector<1xf32> to vector<1x1xf32>
    %cst_95 = arith.constant 1.000000e+00 : f32
    %261 = vector.broadcast %cst_95 : f32 to vector<1x1xf32>
    %262 = arith.mulf %261, %260 : vector<1x1xf32>
    %cst_96 = arith.constant dense<0.000000e+00> : vector<1xf32>
    %263 = vector.multi_reduction <add>, %256, %cst_96 [1] : vector<1x128xf32> to vector<1xf32>
    %264 = vector.shape_cast %263 : vector<1xf32> to vector<1x1xf32>
    %cst_97 = arith.constant dense<0.000000e+00> : vector<1xf32>
    %265 = vector.multi_reduction <add>, %264, %cst_97 [0] : vector<1x1xf32> to vector<1xf32>
    %266 = vector.shape_cast %265 : vector<1xf32> to vector<1x1xf32>
    %267 = vector.broadcast %15 : vector<1x128xi1> to vector<30x128xi1>
    %268 = arith.andi %267, %4 : vector<30x128xi1>
    %269 = arith.extui %268 : vector<30x128xi1> to vector<30x128xi32>
    %270 = arith.sitofp %269 : vector<30x128xi32> to vector<30x128xf32>
    %cst_98 = arith.constant dense<0.000000e+00> : vector<30xf32>
    %271 = vector.multi_reduction <add>, %270, %cst_98 [1] : vector<30x128xf32> to vector<30xf32>
    %272 = vector.shape_cast %271 : vector<30xf32> to vector<30x1xf32>
    %cst_99 = arith.constant dense<0.000000e+00> : vector<1xf32>
    %273 = vector.multi_reduction <add>, %272, %cst_99 [0] : vector<30x1xf32> to vector<1xf32>
    %274 = vector.shape_cast %273 : vector<1xf32> to vector<1x1xf32>
    %cst_100 = arith.constant 0.000000e+00 : f32
    %275 = vector.broadcast %cst_100 : f32 to vector<1x128xf32>
    %276 = arith.cmpf oeq, %153, %275 : vector<1x128xf32>
    %277 = arith.extui %276 : vector<1x128xi1> to vector<1x128xi32>
    %278 = arith.sitofp %277 : vector<1x128xi32> to vector<1x128xf32>
    %cst_101 = arith.constant 1.000000e+00 : f32
    %279 = vector.broadcast %cst_101 : f32 to vector<1x128xf32>
    %280 = arith.cmpf oeq, %153, %279 : vector<1x128xf32>
    %281 = arith.extui %280 : vector<1x128xi1> to vector<1x128xi32>
    %282 = arith.sitofp %281 : vector<1x128xi32> to vector<1x128xf32>
    %cst_102 = arith.constant 2.000000e+00 : f32
    %283 = vector.broadcast %cst_102 : f32 to vector<1x128xf32>
    %284 = arith.cmpf oeq, %153, %283 : vector<1x128xf32>
    %285 = arith.extui %284 : vector<1x128xi1> to vector<1x128xi32>
    %286 = arith.sitofp %285 : vector<1x128xi32> to vector<1x128xf32>
    %cst_103 = arith.constant 3.000000e+00 : f32
    %287 = vector.broadcast %cst_103 : f32 to vector<1x128xf32>
    %288 = arith.cmpf oeq, %153, %287 : vector<1x128xf32>
    %289 = arith.extui %288 : vector<1x128xi1> to vector<1x128xi32>
    %290 = arith.sitofp %289 : vector<1x128xi32> to vector<1x128xf32>
    %cst_104 = arith.constant 4.000000e+00 : f32
    %291 = vector.broadcast %cst_104 : f32 to vector<1x128xf32>
    %292 = arith.cmpf oeq, %153, %291 : vector<1x128xf32>
    %293 = arith.extui %292 : vector<1x128xi1> to vector<1x128xi32>
    %294 = arith.sitofp %293 : vector<1x128xi32> to vector<1x128xf32>
    %cst_105 = arith.constant 5.000000e+00 : f32
    %295 = vector.broadcast %cst_105 : f32 to vector<1x128xf32>
    %296 = arith.cmpf oeq, %153, %295 : vector<1x128xf32>
    %297 = arith.extui %296 : vector<1x128xi1> to vector<1x128xi32>
    %298 = arith.sitofp %297 : vector<1x128xi32> to vector<1x128xf32>
    %cst_106 = arith.constant 0.000000e+00 : f32
    %299 = vector.broadcast %cst_106 : f32 to vector<30x128xf32>
    %c0_107 = arith.constant 0 : index
    %c0_108 = arith.constant 0 : index
    %c0_109 = arith.constant 0 : index
    %c0_110 = arith.constant 0 : index
    %300 = vector.load %arg2[%c0_107, %c0_108, %c0_109, %c0_110] : memref<6x2x30x128xbf16, #tpu.memory_space<vmem>>, vector<1x1x30x128xbf16>
    %301 = vector.shape_cast %300 : vector<1x1x30x128xbf16> to vector<30x128xbf16>
    %302 = arith.extf %301 : vector<30x128xbf16> to vector<30x128xf32>
    %303 = vector.broadcast %278 : vector<1x128xf32> to vector<30x128xf32>
    %304 = arith.mulf %302, %303 : vector<30x128xf32>
    %305 = arith.addf %299, %304 : vector<30x128xf32>
    %c1_111 = arith.constant 1 : index
    %c0_112 = arith.constant 0 : index
    %c0_113 = arith.constant 0 : index
    %c0_114 = arith.constant 0 : index
    %306 = vector.load %arg2[%c1_111, %c0_112, %c0_113, %c0_114] : memref<6x2x30x128xbf16, #tpu.memory_space<vmem>>, vector<1x1x30x128xbf16>
    %307 = vector.shape_cast %306 : vector<1x1x30x128xbf16> to vector<30x128xbf16>
    %308 = arith.extf %307 : vector<30x128xbf16> to vector<30x128xf32>
    %309 = vector.broadcast %282 : vector<1x128xf32> to vector<30x128xf32>
    %310 = arith.mulf %308, %309 : vector<30x128xf32>
    %311 = arith.addf %305, %310 : vector<30x128xf32>
    %c2_115 = arith.constant 2 : index
    %c0_116 = arith.constant 0 : index
    %c0_117 = arith.constant 0 : index
    %c0_118 = arith.constant 0 : index
    %312 = vector.load %arg2[%c2_115, %c0_116, %c0_117, %c0_118] : memref<6x2x30x128xbf16, #tpu.memory_space<vmem>>, vector<1x1x30x128xbf16>
    %313 = vector.shape_cast %312 : vector<1x1x30x128xbf16> to vector<30x128xbf16>
    %314 = arith.extf %313 : vector<30x128xbf16> to vector<30x128xf32>
    %315 = vector.broadcast %286 : vector<1x128xf32> to vector<30x128xf32>
    %316 = arith.mulf %314, %315 : vector<30x128xf32>
    %317 = arith.addf %311, %316 : vector<30x128xf32>
    %c3_119 = arith.constant 3 : index
    %c0_120 = arith.constant 0 : index
    %c0_121 = arith.constant 0 : index
    %c0_122 = arith.constant 0 : index
    %318 = vector.load %arg2[%c3_119, %c0_120, %c0_121, %c0_122] : memref<6x2x30x128xbf16, #tpu.memory_space<vmem>>, vector<1x1x30x128xbf16>
    %319 = vector.shape_cast %318 : vector<1x1x30x128xbf16> to vector<30x128xbf16>
    %320 = arith.extf %319 : vector<30x128xbf16> to vector<30x128xf32>
    %321 = vector.broadcast %290 : vector<1x128xf32> to vector<30x128xf32>
    %322 = arith.mulf %320, %321 : vector<30x128xf32>
    %323 = arith.addf %317, %322 : vector<30x128xf32>
    %c4_123 = arith.constant 4 : index
    %c0_124 = arith.constant 0 : index
    %c0_125 = arith.constant 0 : index
    %c0_126 = arith.constant 0 : index
    %324 = vector.load %arg2[%c4_123, %c0_124, %c0_125, %c0_126] : memref<6x2x30x128xbf16, #tpu.memory_space<vmem>>, vector<1x1x30x128xbf16>
    %325 = vector.shape_cast %324 : vector<1x1x30x128xbf16> to vector<30x128xbf16>
    %326 = arith.extf %325 : vector<30x128xbf16> to vector<30x128xf32>
    %327 = vector.broadcast %294 : vector<1x128xf32> to vector<30x128xf32>
    %328 = arith.mulf %326, %327 : vector<30x128xf32>
    %329 = arith.addf %323, %328 : vector<30x128xf32>
    %c5_127 = arith.constant 5 : index
    %c0_128 = arith.constant 0 : index
    %c0_129 = arith.constant 0 : index
    %c0_130 = arith.constant 0 : index
    %330 = vector.load %arg2[%c5_127, %c0_128, %c0_129, %c0_130] : memref<6x2x30x128xbf16, #tpu.memory_space<vmem>>, vector<1x1x30x128xbf16>
    %331 = vector.shape_cast %330 : vector<1x1x30x128xbf16> to vector<30x128xbf16>
    %332 = arith.extf %331 : vector<30x128xbf16> to vector<30x128xf32>
    %333 = vector.broadcast %298 : vector<1x128xf32> to vector<30x128xf32>
    %334 = arith.mulf %332, %333 : vector<30x128xf32>
    %335 = arith.addf %329, %334 : vector<30x128xf32>
    %336 = arith.subf %335, %22 : vector<30x128xf32>
    %337 = math.absf %336 : vector<30x128xf32>
    %cst_131 = arith.constant 1.000000e+00 : f32
    %338 = vector.broadcast %cst_131 : f32 to vector<30x128xf32>
    %339 = arith.cmpf olt, %337, %338 : vector<30x128xf32>
    %cst_132 = arith.constant 5.000000e-01 : f32
    %340 = vector.broadcast %cst_132 : f32 to vector<30x128xf32>
    %341 = arith.mulf %340, %336 : vector<30x128xf32>
    %342 = arith.mulf %341, %336 : vector<30x128xf32>
    %cst_133 = arith.constant 5.000000e-01 : f32
    %343 = vector.broadcast %cst_133 : f32 to vector<30x128xf32>
    %344 = arith.subf %337, %343 : vector<30x128xf32>
    %345 = arith.select %339, %342, %344 : vector<30x128xi1>, vector<30x128xf32>
    %346 = arith.mulf %345, %270 : vector<30x128xf32>
    %cst_134 = arith.constant dense<0.000000e+00> : vector<30xf32>
    %347 = vector.multi_reduction <add>, %346, %cst_134 [1] : vector<30x128xf32> to vector<30xf32>
    %348 = vector.shape_cast %347 : vector<30xf32> to vector<30x1xf32>
    %cst_135 = arith.constant dense<0.000000e+00> : vector<1xf32>
    %349 = vector.multi_reduction <add>, %348, %cst_135 [0] : vector<30x1xf32> to vector<1xf32>
    %350 = vector.shape_cast %349 : vector<1xf32> to vector<1x1xf32>
    %cst_136 = arith.constant 0.000000e+00 : f32
    %351 = vector.broadcast %cst_136 : f32 to vector<30x128xf32>
    %c0_137 = arith.constant 0 : index
    %c1_138 = arith.constant 1 : index
    %c0_139 = arith.constant 0 : index
    %c0_140 = arith.constant 0 : index
    %352 = vector.load %arg2[%c0_137, %c1_138, %c0_139, %c0_140] : memref<6x2x30x128xbf16, #tpu.memory_space<vmem>>, vector<1x1x30x128xbf16>
    %353 = vector.shape_cast %352 : vector<1x1x30x128xbf16> to vector<30x128xbf16>
    %354 = arith.extf %353 : vector<30x128xbf16> to vector<30x128xf32>
    %355 = vector.broadcast %278 : vector<1x128xf32> to vector<30x128xf32>
    %356 = arith.mulf %354, %355 : vector<30x128xf32>
    %357 = arith.addf %351, %356 : vector<30x128xf32>
    %c1_141 = arith.constant 1 : index
    %c1_142 = arith.constant 1 : index
    %c0_143 = arith.constant 0 : index
    %c0_144 = arith.constant 0 : index
    %358 = vector.load %arg2[%c1_141, %c1_142, %c0_143, %c0_144] : memref<6x2x30x128xbf16, #tpu.memory_space<vmem>>, vector<1x1x30x128xbf16>
    %359 = vector.shape_cast %358 : vector<1x1x30x128xbf16> to vector<30x128xbf16>
    %360 = arith.extf %359 : vector<30x128xbf16> to vector<30x128xf32>
    %361 = vector.broadcast %282 : vector<1x128xf32> to vector<30x128xf32>
    %362 = arith.mulf %360, %361 : vector<30x128xf32>
    %363 = arith.addf %357, %362 : vector<30x128xf32>
    %c2_145 = arith.constant 2 : index
    %c1_146 = arith.constant 1 : index
    %c0_147 = arith.constant 0 : index
    %c0_148 = arith.constant 0 : index
    %364 = vector.load %arg2[%c2_145, %c1_146, %c0_147, %c0_148] : memref<6x2x30x128xbf16, #tpu.memory_space<vmem>>, vector<1x1x30x128xbf16>
    %365 = vector.shape_cast %364 : vector<1x1x30x128xbf16> to vector<30x128xbf16>
    %366 = arith.extf %365 : vector<30x128xbf16> to vector<30x128xf32>
    %367 = vector.broadcast %286 : vector<1x128xf32> to vector<30x128xf32>
    %368 = arith.mulf %366, %367 : vector<30x128xf32>
    %369 = arith.addf %363, %368 : vector<30x128xf32>
    %c3_149 = arith.constant 3 : index
    %c1_150 = arith.constant 1 : index
    %c0_151 = arith.constant 0 : index
    %c0_152 = arith.constant 0 : index
    %370 = vector.load %arg2[%c3_149, %c1_150, %c0_151, %c0_152] : memref<6x2x30x128xbf16, #tpu.memory_space<vmem>>, vector<1x1x30x128xbf16>
    %371 = vector.shape_cast %370 : vector<1x1x30x128xbf16> to vector<30x128xbf16>
    %372 = arith.extf %371 : vector<30x128xbf16> to vector<30x128xf32>
    %373 = vector.broadcast %290 : vector<1x128xf32> to vector<30x128xf32>
    %374 = arith.mulf %372, %373 : vector<30x128xf32>
    %375 = arith.addf %369, %374 : vector<30x128xf32>
    %c4_153 = arith.constant 4 : index
    %c1_154 = arith.constant 1 : index
    %c0_155 = arith.constant 0 : index
    %c0_156 = arith.constant 0 : index
    %376 = vector.load %arg2[%c4_153, %c1_154, %c0_155, %c0_156] : memref<6x2x30x128xbf16, #tpu.memory_space<vmem>>, vector<1x1x30x128xbf16>
    %377 = vector.shape_cast %376 : vector<1x1x30x128xbf16> to vector<30x128xbf16>
    %378 = arith.extf %377 : vector<30x128xbf16> to vector<30x128xf32>
    %379 = vector.broadcast %294 : vector<1x128xf32> to vector<30x128xf32>
    %380 = arith.mulf %378, %379 : vector<30x128xf32>
    %381 = arith.addf %375, %380 : vector<30x128xf32>
    %c5_157 = arith.constant 5 : index
    %c1_158 = arith.constant 1 : index
    %c0_159 = arith.constant 0 : index
    %c0_160 = arith.constant 0 : index
    %382 = vector.load %arg2[%c5_157, %c1_158, %c0_159, %c0_160] : memref<6x2x30x128xbf16, #tpu.memory_space<vmem>>, vector<1x1x30x128xbf16>
    %383 = vector.shape_cast %382 : vector<1x1x30x128xbf16> to vector<30x128xbf16>
    %384 = arith.extf %383 : vector<30x128xbf16> to vector<30x128xf32>
    %385 = vector.broadcast %298 : vector<1x128xf32> to vector<30x128xf32>
    %386 = arith.mulf %384, %385 : vector<30x128xf32>
    %387 = arith.addf %381, %386 : vector<30x128xf32>
    %388 = arith.subf %387, %25 : vector<30x128xf32>
    %389 = math.absf %388 : vector<30x128xf32>
    %cst_161 = arith.constant 1.000000e+00 : f32
    %390 = vector.broadcast %cst_161 : f32 to vector<30x128xf32>
    %391 = arith.cmpf olt, %389, %390 : vector<30x128xf32>
    %cst_162 = arith.constant 5.000000e-01 : f32
    %392 = vector.broadcast %cst_162 : f32 to vector<30x128xf32>
    %393 = arith.mulf %392, %388 : vector<30x128xf32>
    %394 = arith.mulf %393, %388 : vector<30x128xf32>
    %cst_163 = arith.constant 5.000000e-01 : f32
    %395 = vector.broadcast %cst_163 : f32 to vector<30x128xf32>
    %396 = arith.subf %389, %395 : vector<30x128xf32>
    %397 = arith.select %391, %394, %396 : vector<30x128xi1>, vector<30x128xf32>
    %398 = arith.mulf %397, %270 : vector<30x128xf32>
    %cst_164 = arith.constant dense<0.000000e+00> : vector<30xf32>
    %399 = vector.multi_reduction <add>, %398, %cst_164 [1] : vector<30x128xf32> to vector<30xf32>
    %400 = vector.shape_cast %399 : vector<30xf32> to vector<30x1xf32>
    %cst_165 = arith.constant dense<0.000000e+00> : vector<1xf32>
    %401 = vector.multi_reduction <add>, %400, %cst_165 [0] : vector<30x1xf32> to vector<1xf32>
    %402 = vector.shape_cast %401 : vector<1xf32> to vector<1x1xf32>
    %403 = arith.addf %350, %402 : vector<1x1xf32>
    %cst_166 = arith.constant 1.000000e+00 : f32
    %404 = vector.broadcast %cst_166 : f32 to vector<1x1xf32>
    %405 = arith.mulf %404, %403 : vector<1x1xf32>
    %406 = tpu.iota {dimensions = array<i32: 1>} : vector<1x128xi32>
    %c0_i32 = arith.constant 0 : i32
    %407 = vector.broadcast %c0_i32 : i32 to vector<1x128xi32>
    %408 = arith.cmpi eq, %406, %407 : vector<1x128xi32>
    %cst_167 = arith.constant 0.000000e+00 : f32
    %409 = vector.shape_cast %262 : vector<1x1xf32> to vector<1x1xf32>
    %410 = vector.broadcast %409 : vector<1x1xf32> to vector<1x128xf32>
    %411 = vector.broadcast %cst_167 : f32 to vector<1x128xf32>
    %412 = arith.select %408, %410, %411 : vector<1x128xi1>, vector<1x128xf32>
    %c1_i32 = arith.constant 1 : i32
    %413 = vector.broadcast %c1_i32 : i32 to vector<1x128xi32>
    %414 = arith.cmpi eq, %406, %413 : vector<1x128xi32>
    %cst_168 = arith.constant 0.000000e+00 : f32
    %415 = vector.shape_cast %266 : vector<1x1xf32> to vector<1x1xf32>
    %416 = vector.broadcast %415 : vector<1x1xf32> to vector<1x128xf32>
    %417 = vector.broadcast %cst_168 : f32 to vector<1x128xf32>
    %418 = arith.select %414, %416, %417 : vector<1x128xi1>, vector<1x128xf32>
    %419 = arith.addf %412, %418 : vector<1x128xf32>
    %c2_i32 = arith.constant 2 : i32
    %420 = vector.broadcast %c2_i32 : i32 to vector<1x128xi32>
    %421 = arith.cmpi eq, %406, %420 : vector<1x128xi32>
    %cst_169 = arith.constant 0.000000e+00 : f32
    %422 = vector.shape_cast %405 : vector<1x1xf32> to vector<1x1xf32>
    %423 = vector.broadcast %422 : vector<1x1xf32> to vector<1x128xf32>
    %424 = vector.broadcast %cst_169 : f32 to vector<1x128xf32>
    %425 = arith.select %421, %423, %424 : vector<1x128xi1>, vector<1x128xf32>
    %426 = arith.addf %419, %425 : vector<1x128xf32>
    %c3_i32 = arith.constant 3 : i32
    %427 = vector.broadcast %c3_i32 : i32 to vector<1x128xi32>
    %428 = arith.cmpi eq, %406, %427 : vector<1x128xi32>
    %cst_170 = arith.constant 0.000000e+00 : f32
    %429 = vector.shape_cast %274 : vector<1x1xf32> to vector<1x1xf32>
    %430 = vector.broadcast %429 : vector<1x1xf32> to vector<1x128xf32>
    %431 = vector.broadcast %cst_170 : f32 to vector<1x128xf32>
    %432 = arith.select %428, %430, %431 : vector<1x128xi1>, vector<1x128xf32>
    %433 = arith.addf %426, %432 : vector<1x128xf32>
    %434 = vector.shape_cast %433 : vector<1x128xf32> to vector<1x1x128xf32>
    %c0_171 = arith.constant 0 : index
    %c0_172 = arith.constant 0 : index
    %c0_173 = arith.constant 0 : index
    %435 = vector.load %arg5[%c0_171, %c0_172, %c0_173] : memref<1x1x128xf32, #tpu.memory_space<vmem>>, vector<1x1x128xf32>
    tpu.vector_store %arg5[%c0_171, %c0_172, %c0_173], %434 {strides = array<i32>} : memref<1x1x128xf32, #tpu.memory_space<vmem>>, vector<1x1x128xf32>,
    return
  }
  func.func @transform_0(%arg0: i32) -> (i32, i32) {
    %c0_i32 = arith.constant 0 : i32
    %c0_i32_0 = arith.constant 0 : i32
    return %c0_i32, %arg0 : i32, i32
  }
  func.func @transform_1(%arg0: i32) -> (i32, i32, i32, i32) {
    %c0_i32 = arith.constant 0 : i32
    %c0_i32_0 = arith.constant 0 : i32
    %c0_i32_1 = arith.constant 0 : i32
    %c0_i32_2 = arith.constant 0 : i32
    return %c0_i32, %c0_i32_0, %c0_i32_1, %arg0 : i32, i32, i32, i32
  }
  func.func @transform_2(%arg0: i32) -> (i32, i32, i32) {
    %c0_i32 = arith.constant 0 : i32
    %c0_i32_0 = arith.constant 0 : i32
    %c0_i32_1 = arith.constant 0 : i32
    return %c0_i32, %c0_i32_0, %arg0 : i32, i32, i32
  }
  func.func @transform_3(%arg0: i32) -> (i32, i32) {
    %c0_i32 = arith.constant 0 : i32
    %c0_i32_0 = arith.constant 0 : i32
    return %c0_i32, %arg0 : i32, i32
  }
  func.func @transform_4(%arg0: i32) -> (i32, i32, i32) {
    %c0_i32 = arith.constant 0 : i32
    %c0_i32_0 = arith.constant 0 : i32
    %c0_i32_1 = arith.constant 0 : i32
    return %arg0, %c0_i32, %c0_i32_0 : i32, i32, i32
  }
}

</mosaic_0001>

<bundles_post_ra>
// kernel: tpu_custom_call.1
= control target key start
LH: loop header
LB: loop body
LE: loop exit
PB: predicated region body
PF: predicated region fallthrough
CT: control target
= control target key end

     0   :  { %v1922_v0 = vlaneseq  ;;  %s1917_s0 = inlined_call_operand.vmem [shape: f32[6,128], index: 0, kind: input, shape index: {}]   ;;  %s1918_s1 = inlined_call_operand.vmem [shape: bf16[6,2,30,128], index: 1, kind: input, shape index: {}]   ;;  %s1919_s2 = inlined_call_operand.vmem [shape: bf16[2,30,128], index: 2, kind: input, shape index: {}]   ;;  %s1920_s3 = inlined_call_operand.vmem [shape: s8[30,128], index: 3, kind: input, shape index: {}]   ;;  %s1921_s4 = inlined_call_operand.hbm [shape: f32[1,1,128], index: 4, kind: output, shape index: {}]  }
   0x1   :  { %9 = vsyncpa [#allocation3], 0  ;;  %v1036_v2 = vmov 30.0   ;;  %v995_v7 = vld [vmem:[%s1920_s3] sm:$0xff]   ;;  %vm63_vm1 = vcmask 1045504   ;;  %v1109_v42 = vld [vmem:[%s1919_s2 + $0x10] sm:$0xff]  }
   0x2   :  { %v1065_v1 = vshrl.u32 %v1922_v0, 7  ;;  %1006 = vrcp.f32 %v1036_v2  ;;  %v996_v14 = vunpack.c.0.s8 %v995_v7  ;;  %v997_v15 = vunpack.c.1.s8 %v995_v7  ;;  %v1104_v40 = vld [vmem:[%s1919_s2] sm:$0xff]   ;;  %v1119_v44 = vld [vmem:[%s1919_s2 + $0x8] sm:$0xf]  ;;  %v1124_v45 = vld [vmem:[%s1919_s2 + $0xc] sm:$0x7] }
   0x3   :  { %v1000_v16 = vunpack.c.2.s8 %v995_v7  ;;  %v1001_v17 = vunpack.c.3.s8 %v995_v7  ;;  %v1114_v43 = vld [vmem:[%s1918_s1] sm:$0xff]   ;;  %1975 = vst [vmem:[#allocation7_spill] sm:$0xff] %v1124_v45  ;;  %v1924_v47 = vunpack.c.l.bf16 %v1104_v40  ;;  %v1130_v48 = vld [vmem:[%s1919_s2 + $0x18] sm:$0xf]  ;;  %v1135_v49 = vld [vmem:[%s1919_s2 + $0x1c] sm:$0x7]  ;;  %v1925_v51 = vunpack.c.h.bf16 %v1104_v40 }
   0x4   :  { %1973 = vst [vmem:[#allocation5_spill] sm:$0xff] %v1065_v1  ;;  %v37_v3 = vadd.s32 8, %v1065_v1  ;;  %v38_v4 = vadd.s32 16, %v1065_v1  ;;  %v39_v5 = vadd.s32 24, %v1065_v1  ;;  %v1923_v8 = vcvt.s32.f32 %v1065_v1  ;;  %v1140_v50 = vld [vmem:[%s1918_s1 + $0x10] sm:$0xff]   ;;  %v1173_v63 = vld [vmem:[%s1918_s1 + $0x20] sm:$0xff]  }
   0x5   :  { %v1076_v24 = vcvt.s32.f32 %v996_v14  ;;  %v1078_v25 = vcvt.s32.f32 %v997_v15  ;;  %v1080_v26 = vcvt.s32.f32 %v1000_v16  ;;  %v1082_v27 = vcvt.s32.f32 %v1001_v17  ;;  %1976 = vst [vmem:[#allocation8_spill] sm:$0xff] %v1130_v48  ;;  %v1149_v55 = vld [vmem:[%s1918_s1 + $0x8] sm:$0xf]  ;;  %v1154_v56 = vld [vmem:[%s1918_s1 + $0xc] sm:$0x7]  ;;  %v1210_v16 = vld [vmem:[%s1918_s1 + $0x40] sm:$0xff]  }
   0x6   :  { %v41_v10 = vcvt.s32.f32 %v37_v3  ;;  %v42_v11 = vcvt.s32.f32 %v38_v4  ;;  %v43_v12 = vcvt.s32.f32 %v39_v5  ;;  %v44_v18 = vmul.f32 0.1, %v1923_v8  ;;  %1977 = vst [vmem:[#allocation9_spill] sm:$0xff] %v1135_v49  ;;  %v1159_v57 = vld [vmem:[%s1918_s1 + $0x18] sm:$0xf]  ;;  %s840_s20 = sshll.u32 %s1921_s4, 4  ;;  %s841_s20 = int_to_ptr.hbm [resolvable:$true] %s840_s20 }
   0x7   :  { %1974 = vst [vmem:[#allocation6_spill] sm:$0xff] %v1082_v27  ;;  %v1930_v52 = vunpack.c.l.bf16 %v1109_v42  ;;  %v1931_v53 = vunpack.c.h.bf16 %v1109_v42  ;;  %v1935_v54 = vunpack.c.l.bf16 %v1114_v43  ;;  %vm31_vm2 = vcmp.gt.f32.partialorder %v1076_v24, 0.5  ;;  %v1168_v62 = vld [vmem:[%s1918_s1 + $0x1c] sm:$0x7]  ;;  %v1178_v2 = vld [vmem:[%s1918_s1 + $0x28] sm:$0xf] }
   0x8   :  { %v1007_v6 = vpop.eup %1006  ;;  %v45_v20 = vmul.f32 0.1, %v41_v10  ;;  %v46_v21 = vmul.f32 0.1, %v42_v11  ;;  %v47_v22 = vmul.f32 0.1, %v43_v12  ;;  %v1928_v59 = vunpack.c.l.bf16 %v1119_v44 }
   0x9   :  { %v49_v9 = vmul.f32 30.0, %v1007_v6  ;;  %vm53_vm0 = vweird.f32 %v1007_v6  ;;  %1978 = vst [vmem:[#allocation10_spill] sm:$0xff] %v1154_v56  ;;  %v1929_v60 = vunpack.c.l.bf16 %v1124_v45  ;;  %v1934_v61 = vunpack.c.h.bf16 %v1114_v43  ;;  %v1187_v7 = vld [vmem:[%s1918_s1 + $0x2c] sm:$0x7]  ;;  %v1200_v14 = vld [vmem:[%s1918_s1 + $0x38] sm:$0xf] }
   0xa   :  { %v1932_v3 = vunpack.c.l.bf16 %v1130_v48  ;;  %v1933_v4 = vunpack.c.l.bf16 %v1135_v49  ;;  %v1938_v5 = vunpack.c.l.bf16 %v1140_v50  ;;  %1979 = vst [vmem:[#allocation11_spill] sm:$0xff] %v1187_v7  ;;  %v1936_v11 = vunpack.c.l.bf16 %v1149_v55  ;;  %v1205_v15 = vld [vmem:[%s1918_s1 + $0x3c] sm:$0x7]  ;;  %v1261_v0 = vld [vmem:[%s1918_s1 + $0x6c] sm:$0x7] }
   0xb   :  { %v50_v13 = vsub.f32 1.0, %v49_v9  ;;  %v1192_v9 = vld [vmem:[%s1918_s1 + $0x30] sm:$0xff]   ;;  %v1937_v12 = vunpack.c.l.bf16 %v1154_v56  ;;  %1982 = vst [vmem:[#allocation14_spill] sm:$0xff] %v1261_v0  ;;  %vm33_vm13 = vcmp.gt.f32.partialorder %v1080_v26, 0.5 }
   0xd   :  { %v51_v19 = vmul.f32 %v1007_v6, %v50_v13 }
   0xf   :  { %v52_v23 = vadd.f32 %v1007_v6, %v51_v19 }
  0x11   :  { %v54_v28 = vsel %vm53_vm0, %v1007_v6, %v52_v23  ;;  %v1229_v23 = vld [vmem:[%s1918_s1 + $0x50] sm:$0xff]  }
  0x12   :  { %v55_v29 = vmul.f32 %v54_v28, %v44_v18  ;;  %v56_v30 = vmul.f32 %v54_v28, %v45_v20  ;;  %v57_v31 = vmul.f32 %v54_v28, %v46_v21  ;;  %v58_v32 = vmul.f32 %v54_v28, %v47_v22  ;;  %v1219_v21 = vld [vmem:[%s1918_s1 + $0x48] sm:$0xf]  ;;  %v1224_v22 = vld [vmem:[%s1918_s1 + $0x4c] sm:$0x7] }
  0x13   :  { %1980 = vst [vmem:[#allocation12_spill] sm:$0xff] %v1224_v22  ;;  %v1985_v18 = vunpack.c.l.bf16 %v1159_v57 }
  0x14   :  { %v1085_v33 = vadd.f32 %v55_v29, %v1076_v24  ;;  %v1088_v34 = vadd.f32 %v56_v30, %v1078_v25  ;;  %v1091_v35 = vadd.f32 %v57_v31, %v1080_v26  ;;  %v1094_v36 = vadd.f32 %v58_v32, %v1082_v27  ;;  %v1237_v32 = vld [vmem:[%s1918_s1 + $0x58] sm:$0xf]  ;;  %v1279_v30 = vld [vmem:[%s1918_s1 + $0x7c] sm:$0x7] }
  0x15   :  { %1983 = vst [vmem:[#allocation15_spill] sm:$0xff] %v1279_v30 }
  0x16   :  { %v64_v37 = vsel %vm63_vm1, %v1094_v36, -inf  ;;  %v65_v38 = vmax.f32 %v1085_v33, %v1088_v34 }
  0x17   :  { %v66_v39 = vmax.f32 %v1091_v35, %v64_v37  ;;  %v1242_v37 = vld [vmem:[%s1918_s1 + $0x5c] sm:$0x7] }
  0x18   :  { %1981 = vst [vmem:[#allocation13_spill] sm:$0xff] %v1242_v37 }
  0x19   :  { %v67_v41 = vmax.f32 %v65_v38, %v66_v39  ;;  %v1247_v38 = vld [vmem:[%s1918_s1 + $0x60] sm:$0xff]  }
  0x1b   :  { %v68_v46 = vrot.slane %v67_v41, 4 }
  0x1d   :  { %v69_v58 = vmax.f32 %v67_v41, %v68_v46  ;;  %v1274_v46 = vld [vmem:[%s1918_s1 + $0x78] sm:$0xf] }
  0x1f   :  { %v70_v10 = vrot.slane %v69_v58, 2 }
  0x21   :  { %v71_v28 = vmax.f32 %v69_v58, %v70_v10  ;;  %v1256_v10 = vld [vmem:[%s1918_s1 + $0x68] sm:$0xf]  ;;  %v1269_v58 = vld [vmem:[%s1918_s1 + $0x70] sm:$0xff]  }
  0x23   :  { %v72_v8 = vrot.slane %v71_v28, 1 }
  0x25   :  { %v1285_v20 = vmax.f32 %v71_v28, %v72_v8  ;;  %v1926_v8 = vmov 0.0  }
  0x27   :  { %vm74_vm3 = vcmp.gt.f32.partialorder %v1285_v20, 1.0  ;;  %vm75_vm4 = vcmp.eq.f32.partialorder %v1085_v33, %v1285_v20  ;;  %vm76_vm5 = vcmp.eq.f32.partialorder %v1088_v34, %v1285_v20  ;;  %vm77_vm6 = vcmp.eq.f32.partialorder %v1091_v35, %v1285_v20 }
  0x28   :  { %vm78_vm7 = vcmp.eq.f32.partialorder %v1094_v36, %v1285_v20  ;;  %v1304_v28 = vsel %vm75_vm4, 1.0, %v1926_v8  ;;  %v1307_v39 = vsel %vm76_vm5, 1.0, %v1926_v8  ;;  %v1310_v31 = vsel %vm77_vm6, 1.0, %v1926_v8  ;;  %vm571_vm8 = vmand %vm74_vm3, %vm31_vm2 }
  0x29   :  { %v1317_v33 = vsel %vm78_vm7, 1.0, %v1926_v8  ;;  %v104_v34 = vmul.f32 %v1924_v47, %v1304_v28  ;;  %v105_v35 = vmul.f32 %v1925_v51, %v1307_v39  ;;  %v1326_v36 = vsel %vm571_vm8, 1.0, %v1926_v8  ;;  %vm573_vm14 = vmand %vm74_vm3, %vm33_vm13 }
  0x2a   :  { %583 = vadd.xlane.f32.xlu2 %v1326_v36  ;;  %v106_v24 = vmul.f32 %v1310_v31, %v1928_v59  ;;  %v107_v6 = vmul.f32 %v1317_v33, %v1929_v60  ;;  %v118_v47 = vmul.f32 %v1930_v52, %v1304_v28  ;;  %v119_v51 = vmul.f32 %v1931_v53, %v1307_v39 }
  0x2b   :  { %v108_v8 = vadd.f32 %v105_v35, %v104_v34  ;;  %v120_v13 = vmul.f32 %v1310_v31, %v1932_v3  ;;  %v121_v59 = vmul.f32 %v1317_v33, %v1933_v4  ;;  %v140_v60 = vmul.f32 %v1935_v54, %v1304_v28 }
  0x2c   :  { %v110_v17 = vsel %vm63_vm1, %v107_v6, 0.0  ;;  %v122_v52 = vadd.f32 %v119_v51, %v118_v47  ;;  %v141_v53 = vmul.f32 %v1934_v61, %v1307_v39  ;;  %v142_v34 = vmul.f32 %v1310_v31, %v1936_v11 }
  0x2d   :  { %v109_v35 = vadd.f32 %v108_v8, %v106_v24  ;;  %v124_v3 = vsel %vm63_vm1, %v121_v59, 0.0  ;;  %v143_v4 = vmul.f32 %v1317_v33, %v1937_v12  ;;  %v163_v6 = vmul.f32 %v1938_v5, %v1304_v28 }
  0x2e   :  { %v123_v47 = vadd.f32 %v122_v52, %v120_v13  ;;  %v144_v51 = vadd.f32 %v141_v53, %v140_v60  ;;  %v1984_v61 = vunpack.c.h.bf16 %v1140_v50  ;;  %v165_v8 = vmul.f32 %v1310_v31, %v1985_v18 }
  0x2f   :  { %v111_v24 = vadd.f32 %v110_v17, %v109_v35  ;;  %v146_v59 = vsel %vm63_vm1, %v143_v4, 0.0  ;;  %v1986_v11 = vunpack.c.l.bf16 %v1168_v62  ;;  %v1987_v5 = vunpack.c.l.bf16 %v1173_v63 }
  0x30   :  { %v164_v54 = vmul.f32 %v1984_v61, %v1307_v39  ;;  %v125_v53 = vadd.f32 %v124_v3, %v123_v47  ;;  %v145_v60 = vadd.f32 %v144_v51, %v142_v34  ;;  %v1988_v61 = vunpack.c.h.bf16 %v1173_v63 }
  0x31   :  { %v166_v12 = vmul.f32 %v1317_v33, %v1986_v11  ;;  %v191_v52 = vmul.f32 %v1987_v5, %v1304_v28  ;;  %v112_v29 = vrot.slane %v111_v24, 4  ;;  %v1989_v4 = vunpack.c.l.bf16 %v1178_v2 }
  0x32   :  { %v167_v13 = vadd.f32 %v164_v54, %v163_v6  ;;  %v192_v19 = vmul.f32 %v1988_v61, %v1307_v39  ;;  %v1990_v11 = vunpack.c.l.bf16 %v1187_v7  ;;  %v126_v41 = vrot.slane %v125_v53, 4 }
  0x33   :  { %v169_v17 = vsel %vm63_vm1, %v166_v12, 0.0  ;;  %v193_v18 = vmul.f32 %v1310_v31, %v1989_v4  ;;  %v147_v5 = vadd.f32 %v146_v59, %v145_v60  ;;  %v113_v54 = vadd.f32 %v112_v29, %v111_v24 }
  0x34   :  { %v194_v35 = vmul.f32 %v1317_v33, %v1990_v11  ;;  %v168_v3 = vadd.f32 %v167_v13, %v165_v8  ;;  %v195_v34 = vadd.f32 %v192_v19, %v191_v52  ;;  %v1991_v47 = vunpack.c.l.bf16 %v1192_v9 }
  0x35   :  { %v1992_v12 = vunpack.c.h.bf16 %v1192_v9  ;;  %v127_v4 = vadd.f32 %v126_v41, %v125_v53  ;;  %v148_v45 = vrot.slane %v147_v5, 4  ;;  %v114_v11 = vrot.slane %v113_v54, 2 }
  0x36   :  { %v197_v6 = vsel %vm63_vm1, %v194_v35, 0.0  ;;  %v214_v51 = vmul.f32 %v1991_v47, %v1304_v28  ;;  %v170_v49 = vadd.f32 %v169_v17, %v168_v3  ;;  %v196_v1 = vadd.f32 %v195_v34, %v193_v18 }
  0x37   :  { %v215_v61 = vmul.f32 %v1992_v12, %v1307_v39  ;;  %v1993_v59 = vunpack.c.l.bf16 %v1200_v14  ;;  %v1994_v29 = vunpack.c.l.bf16 %v1205_v15  ;;  %v128_v52 = vrot.slane %v127_v4, 2 }
  0x38   :  { %v149_v60 = vadd.f32 %v148_v45, %v147_v5  ;;  %v171_v13 = vrot.slane %v170_v49, 4  ;;  %v198_v35 = vadd.f32 %v197_v6, %v196_v1  ;;  %v115_v47 = vadd.f32 %v114_v11, %v113_v54 }
  0x39   :  { %v216_v19 = vmul.f32 %v1310_v31, %v1993_v59  ;;  %v217_v8 = vmul.f32 %v1317_v33, %v1994_v29  ;;  %v218_v24 = vadd.f32 %v215_v61, %v214_v51  ;;  %v1995_v53 = vunpack.c.l.bf16 %v1210_v16 }
  0x3a   :  { %v129_v18 = vadd.f32 %v128_v52, %v127_v4  ;;  %v150_v3 = vrot.slane %v149_v60, 2  ;;  %v172_v34 = vadd.f32 %v171_v13, %v170_v49  ;;  %v199_v59 = vrot.slane %v198_v35, 4 }
  0x3b   :  { %v219_v12 = vadd.f32 %v218_v24, %v216_v19  ;;  %v220_v41 = vsel %vm63_vm1, %v217_v8, 0.0  ;;  %v245_v17 = vmul.f32 %v1995_v53, %v1304_v28  ;;  %v116_v27 = vrot.slane %v115_v47, 1 }
  0x3c   :  { %v1996_v51 = vunpack.c.h.bf16 %v1210_v16  ;;  %v1997_v1 = vunpack.c.l.bf16 %v1219_v21  ;;  %v130_v54 = vrot.slane %v129_v18, 1  ;;  %v151_v6 = vadd.f32 %v150_v3, %v149_v60 }
  0x3d   :  { %v221_v48 = vadd.f32 %v220_v41, %v219_v12  ;;  %v173_v61 = vrot.slane %v172_v34, 2  ;;  %v200_v11 = vadd.f32 %v199_v59, %v198_v35  ;;  %v1410_v19 = vadd.f32 %v116_v27, %v115_v47 }
  0x3e   :  { %v246_v45 = vmul.f32 %v1996_v51, %v1307_v39  ;;  %v247_v5 = vmul.f32 %v1310_v31, %v1997_v1  ;;  %v1998_v49 = vunpack.c.l.bf16 %v1224_v22  ;;  %v1415_v24 = vadd.f32 %v130_v54, %v129_v18 }
  0x3f   :  { %v222_v4 = vrot.slane %v221_v48, 4  ;;  %v152_v52 = vrot.slane %v151_v6, 1  ;;  %v174_v13 = vadd.f32 %v173_v61, %v172_v34  ;;  %v201_v12 = vrot.slane %v200_v11, 2 }
  0x40   :  { %v248_v29 = vmul.f32 %v1317_v33, %v1998_v49  ;;  %v249_v8 = vadd.f32 %v246_v45, %v245_v17  ;;  %v1999_v60 = vunpack.c.l.bf16 %v1229_v23  ;;  %v2000_v59 = vunpack.c.h.bf16 %v1229_v23 }
  0x41   :  { %v223_v41 = vadd.f32 %v222_v4, %v221_v48  ;;  %v153_v35 = vadd.f32 %v152_v52, %v151_v6  ;;  %v175_v47 = vrot.slane %v174_v13, 1  ;;  %v202_v3 = vadd.f32 %v201_v12, %v200_v11 }
  0x42   :  { %v250_v53 = vadd.f32 %v249_v8, %v247_v5  ;;  %v251_v51 = vsel %vm63_vm1, %v248_v29, 0.0  ;;  %v268_v27 = vmul.f32 %v1999_v60, %v1304_v28  ;;  %v269_v17 = vmul.f32 %v2000_v59, %v1307_v39 }
  0x43   :  { %v224_v18 = vrot.slane %v223_v41, 2  ;;  %v2001_v34 = vunpack.c.l.bf16 %v1237_v32  ;;  %v2002_v1 = vunpack.c.l.bf16 %v1242_v37  ;;  %v176_v54 = vadd.f32 %v175_v47, %v174_v13 }
  0x44   :  { %v252_v45 = vadd.f32 %v251_v51, %v250_v53  ;;  %v177_v61 = vsub.f32 %v153_v35, %v1410_v19  ;;  %v203_v6 = vrot.slane %v202_v3, 1  ;;  %v272_v4 = vadd.f32 %v269_v17, %v268_v27 }
  0x45   :  { %v270_v48 = vmul.f32 %v1310_v31, %v2001_v34  ;;  %v271_v5 = vmul.f32 %v1317_v33, %v2002_v1  ;;  %v225_v11 = vadd.f32 %v224_v18, %v223_v41  ;;  %v2003_v8 = vunpack.c.l.bf16 %v1247_v38 }
  0x46   :  { %v253_v49 = vrot.slane %v252_v45, 4  ;;  %v178_v12 = vsub.f32 %v176_v54, %v1415_v24  ;;  %v179_v53 = vmul.f32 %v177_v61, %v177_v61  ;;  %v204_v51 = vadd.f32 %v203_v6, %v202_v3  ;;  %v1452_v6 = vld [vmem:[%s1918_s1 + $0x80] sm:$0xff]  }
  0x47   :  { %v274_v29 = vsel %vm63_vm1, %v271_v5, 0.0  ;;  %v299_v52 = vmul.f32 %v2003_v8, %v1304_v28  ;;  %v273_v60 = vadd.f32 %v272_v4, %v270_v48  ;;  %v226_v59 = vrot.slane %v225_v11, 1 }
  0x48   :  { %v254_v34 = vadd.f32 %v253_v49, %v252_v45  ;;  %v2004_v13 = vunpack.c.h.bf16 %v1247_v38  ;;  %v2005_v41 = vunpack.c.l.bf16 %v1256_v10  ;;  %v180_v47 = vmul.f32 %v178_v12, %v178_v12 }
  0x49   :  { %v228_v17 = vsub.f32 %v204_v51, %v1410_v19  ;;  %v275_v18 = vadd.f32 %v274_v29, %v273_v60  ;;  %v2006_v1 = vunpack.c.l.bf16 %v1261_v0  ;;  %v227_v3 = vadd.f32 %v226_v59, %v225_v11  ;;  %v1464_v59 = vld [vmem:[%s1918_s1 + $0x88] sm:$0xf] }
  0x4a   :  { %v300_v35 = vmul.f32 %v2004_v13, %v1307_v39  ;;  %v301_v27 = vmul.f32 %v1310_v31, %v2005_v41  ;;  %v255_v48 = vrot.slane %v254_v34, 2  ;;  %v2007_v45 = vunpack.c.l.bf16 %v1269_v58 }
  0x4b   :  { %v302_v5 = vmul.f32 %v1317_v33, %v2006_v1  ;;  %v1454_v4 = vadd.f32 %v180_v47, %v179_v53  ;;  %v230_v49 = vmul.f32 %v228_v17, %v228_v17  ;;  %v276_v29 = vrot.slane %v275_v18, 4 }
  0x4c   :  { %v303_v54 = vadd.f32 %v300_v35, %v299_v52  ;;  %v322_v61 = vmul.f32 %v2007_v45, %v1304_v28  ;;  %v229_v12 = vsub.f32 %v227_v3, %v1415_v24  ;;  %v256_v11 = vadd.f32 %v255_v48, %v254_v34  ;;  %v1476_v3 = vld [vmem:[%s1918_s1 + $0x8c] sm:$0x7] }
  0x4d   :  { %2008 = vst [vmem:[#allocation16_spill] sm:$0xff] %v1454_v4  ;;  %v305_v8 = vsel %vm63_vm1, %v302_v5, 0.0  ;;  %v2009_v52 = vunpack.c.h.bf16 %v1269_v58  ;;  %v277_v13 = vadd.f32 %v276_v29, %v275_v18  ;;  %v2010_v53 = vunpack.c.l.bf16 %v1274_v46 }
  0x4e   :  { %v304_v51 = vadd.f32 %v303_v54, %v301_v27  ;;  %v2011_v41 = vunpack.c.l.bf16 %v1279_v30  ;;  %v1945_v34 = vunpack.c.l.bf16 %v1452_v6  ;;  %v231_v27 = vmul.f32 %v229_v12, %v229_v12  ;;  %2012 = vst [vmem:[#allocation17_spill] sm:$0xff] %v1476_v3 }
  0x4f   :  { %v323_v60 = vmul.f32 %v2009_v52, %v1307_v39  ;;  %v324_v35 = vmul.f32 %v1310_v31, %v2010_v53  ;;  %v257_v17 = vrot.slane %v256_v11, 1  ;;  %v278_v18 = vrot.slane %v277_v13, 2 }
  0x50   :  { %v325_v47 = vmul.f32 %v1317_v33, %v2011_v41  ;;  %v306_v1 = vadd.f32 %v305_v8, %v304_v51  ;;  %v1944_v54 = vunpack.c.h.bf16 %v1452_v6  ;;  %v1481_v29 = vadd.f32 %v231_v27, %v230_v49  ;;  %v1494_v49 = vld [vmem:[%s1918_s1 + $0x90] sm:$0xff]   ;;  %v1502_v27 = vld [vmem:[%s1918_s1 + $0x98] sm:$0xf] }
  0x51   :  { %v326_v5 = vadd.f32 %v323_v60, %v322_v61  ;;  %v258_v52 = vadd.f32 %v257_v17, %v256_v11  ;;  %v279_v41 = vadd.f32 %v278_v18, %v277_v13  ;;  %v1947_v61 = vunpack.c.l.bf16 %v1476_v3 }
  0x52   :  { %v328_v48 = vsel %vm63_vm1, %v325_v47, 0.0  ;;  %2013 = vst [vmem:[#allocation18_spill] sm:$0xff] %v1481_v29  ;;  %v307_v53 = vrot.slane %v306_v1, 4  ;;  %v353_v8 = vmul.f32 %v1945_v34, %v1304_v28  ;;  %v354_v51 = vmul.f32 %v1944_v54, %v1307_v39 }
  0x53   :  { %v327_v12 = vadd.f32 %v326_v5, %v324_v35  ;;  %v282_v60 = vsub.f32 %v258_v52, %v1410_v19  ;;  %v280_v11 = vrot.slane %v279_v41, 1  ;;  %v2014_v13 = vunpack.c.l.bf16 %v1464_v59 }
  0x54   :  { %v308_v47 = vadd.f32 %v307_v53, %v306_v1  ;;  %v356_v1 = vmul.f32 %v1317_v33, %v1947_v61  ;;  %v357_v53 = vadd.f32 %v354_v51, %v353_v8  ;;  %v1951_v0 = vunpack.c.l.bf16 %v1502_v27  ;;  %v1519_v61 = vld [vmem:[%s1918_s1 + $0xa0] sm:$0xff]  }
  0x55   :  { %v329_v45 = vadd.f32 %v328_v48, %v327_v12  ;;  %v355_v35 = vmul.f32 %v1310_v31, %v2014_v13  ;;  %v284_v17 = vmul.f32 %v282_v60, %v282_v60  ;;  %v1510_v48 = vld [vmem:[%s1918_s1 + $0x9c] sm:$0x7]  ;;  %v281_v52 = vadd.f32 %v280_v11, %v279_v41 }
  0x56   :  { %v309_v5 = vrot.slane %v308_v47, 2  ;;  %2015 = vst [vmem:[#allocation19_spill] sm:$0xff] %v1510_v48  ;;  %v1952_v12 = vunpack.c.l.bf16 %v1494_v49  ;;  %v1950_v13 = vunpack.c.h.bf16 %v1494_v49  ;;  %v359_v60 = vsel %vm63_vm1, %v356_v1, 0.0 }
  0x57   :  { %v330_v18 = vrot.slane %v329_v45, 4  ;;  %v283_v3 = vsub.f32 %v281_v52, %v1415_v24  ;;  %v358_v22 = vadd.f32 %v357_v53, %v355_v35  ;;  %v1955_v41 = vunpack.c.l.bf16 %v1510_v48  ;;  %v1535_v35 = vld [vmem:[%s1918_s1 + $0xa8] sm:$0xf]  ;;  %v1544_v53 = vld [vmem:[%s1918_s1 + $0xac] sm:$0x7] }
  0x58   :  { %v310_v54 = vadd.f32 %v309_v5, %v308_v47  ;;  %v376_v8 = vmul.f32 %v1952_v12, %v1304_v28  ;;  %v377_v47 = vmul.f32 %v1950_v13, %v1307_v39  ;;  %v378_v11 = vmul.f32 %v1310_v31, %v1951_v0  ;;  %2016 = vst [vmem:[#allocation20_spill] sm:$0xff] %v1544_v53 }
  0x59   :  { %v331_v34 = vadd.f32 %v330_v18, %v329_v45  ;;  %v285_v5 = vmul.f32 %v283_v3, %v283_v3  ;;  %v360_v18 = vadd.f32 %v359_v60, %v358_v22  ;;  %v379_v1 = vmul.f32 %v1317_v33, %v1955_v41 }
  0x5a   :  { %v311_v51 = vrot.slane %v310_v54, 1  ;;  %v380_v12 = vadd.f32 %v377_v47, %v376_v8  ;;  %v1959_v7 = vunpack.c.h.bf16 %v1519_v61  ;;  %v1961_v60 = vunpack.c.l.bf16 %v1535_v35  ;;  %v1562_v8 = vld [vmem:[%s1918_s1 + $0xb0] sm:$0xff]  }
  0x5b   :  { %v332_v45 = vrot.slane %v331_v34, 2  ;;  %v1547_v56 = vadd.f32 %v285_v5, %v284_v17  ;;  %v361_v3 = vrot.slane %v360_v18, 4  ;;  %v382_v22 = vsel %vm63_vm1, %v379_v1, 0.0 }
  0x5c   :  { %v312_v13 = vadd.f32 %v311_v51, %v310_v54  ;;  %v381_v48 = vadd.f32 %v380_v12, %v378_v11  ;;  %v1960_v30 = vunpack.c.l.bf16 %v1544_v53  ;;  %v408_v17 = vmul.f32 %v1959_v7, %v1307_v39  ;;  %v1567_v12 = vld [vmem:[%s1918_s1 + $0xb8] sm:$0xf] }
  0x5d   :  { %v333_v0 = vadd.f32 %v332_v45, %v331_v34  ;;  %2017 = vst [vmem:[#allocation21_spill] sm:$0xff] %v1547_v56  ;;  %v362_v37 = vadd.f32 %v361_v3, %v360_v18  ;;  %v2018_v34 = vunpack.c.l.bf16 %v1519_v61  ;;  %v409_v11 = vmul.f32 %v1310_v31, %v1961_v60 }
  0x5e   :  { %v336_v52 = vsub.f32 %v312_v13, %v1410_v19  ;;  %v383_v47 = vadd.f32 %v382_v22, %v381_v48  ;;  %v410_v5 = vmul.f32 %v1317_v33, %v1960_v30  ;;  %v980_v1 = vunpack.c.l.bf16 %v1562_v8 }
  0x5f   :  { %v334_v41 = vrot.slane %v333_v0, 1  ;;  %v407_v54 = vmul.f32 %v2018_v34, %v1304_v28  ;;  %v363_v13 = vrot.slane %v362_v37, 2  ;;  %v1965_v48 = vunpack.c.h.bf16 %v1562_v8 }
  0x60   :  { %v338_v45 = vmul.f32 %v336_v52, %v336_v52  ;;  %v384_v3 = vrot.slane %v383_v47, 4  ;;  %v413_v22 = vsel %vm63_vm1, %v410_v5, 0.0  ;;  %v1964_v34 = vunpack.c.l.bf16 %v1567_v12 }
  0x61   :  { %v335_v51 = vadd.f32 %v334_v41, %v333_v0  ;;  %v1578_v0 = vld [vmem:[%s1918_s1 + $0xbc] sm:$0x7]  ;;  %v411_v18 = vadd.f32 %v408_v17, %v407_v54  ;;  %v364_v52 = vadd.f32 %v363_v13, %v362_v37  ;;  %v430_v53 = vmul.f32 %v980_v1, %v1304_v28 }
  0x62   :  { %2019 = vst [vmem:[#allocation22_spill] sm:$0xff] %v1578_v0  ;;  %v1963_v60 = vunpack.c.l.bf16 %v1578_v0  ;;  %v385_v54 = vadd.f32 %v384_v3, %v383_v47  ;;  %v431_v17 = vmul.f32 %v1965_v48, %v1307_v39  ;;  %v432_v5 = vmul.f32 %v1310_v31, %v1964_v34 }
  0x63   :  { %v337_v41 = vsub.f32 %v335_v51, %v1415_v24  ;;  %v412_v30 = vadd.f32 %v411_v18, %v409_v11  ;;  %v365_v51 = vrot.slane %v364_v52, 1  ;;  %vm233_vm9 = vcmp.lt.f32.partialorder %v1481_v29, %v1454_v4 }
  0x64   :  { %v433_v11 = vmul.f32 %v1317_v33, %v1963_v60  ;;  %v386_v18 = vrot.slane %v385_v54, 2  ;;  %v434_v28 = vadd.f32 %v431_v17, %v430_v53  ;;  %v235_v31 = vsel %vm233_vm9, %v1481_v29, %v1454_v4 }
  0x65   :  { %v339_v7 = vmul.f32 %v337_v41, %v337_v41  ;;  %v414_v13 = vadd.f32 %v413_v22, %v412_v30  ;;  %v366_v41 = vadd.f32 %v365_v51, %v364_v52  ;;  %vm287_vm10 = vcmp.lt.f32.partialorder %v1547_v56, %v235_v31 }
  0x66   :  { %v387_v3 = vadd.f32 %v386_v18, %v385_v54  ;;  %v436_v30 = vsel %vm63_vm1, %v433_v11, 0.0  ;;  %v2033_v48 = vunpack.c.l.bf16 %v1452_v6  ;;  %v2036_v29 = vunpack.c.l.bf16 %v1178_v2 }
  0x67   :  { %v1592_v37 = vadd.f32 %v339_v7, %v338_v45  ;;  %v415_v47 = vrot.slane %v414_v13, 4  ;;  %v390_v7 = vsub.f32 %v366_v41, %v1410_v19  ;;  %v435_v45 = vadd.f32 %v434_v28, %v432_v5 }
  0x68   :  { %v388_v33 = vrot.slane %v387_v3, 1  ;;  %v289_v5 = vsel %vm287_vm10, %v1547_v56, %v235_v31  ;;  %v2035_v56 = vunpack.c.l.bf16 %v1149_v55  ;;  %vm32_vm8 = vcmp.gt.f32.partialorder %v1078_v25, 0.5 }
  0x69   :  { %2020 = vst [vmem:[#allocation23_spill] sm:$0xff] %v1592_v37  ;;  %v416_v39 = vadd.f32 %v415_v47, %v414_v13  ;;  %v437_v53 = vadd.f32 %v436_v30, %v435_v45  ;;  %v392_v41 = vmul.f32 %v390_v7, %v390_v7  ;;  %vm341_vm11 = vcmp.lt.f32.partialorder %v1592_v37, %v289_v5 }
  0x6a   :  { %v389_v22 = vadd.f32 %v388_v33, %v387_v3  ;;  %v343_v33 = vsel %vm341_vm11, %v1592_v37, %v289_v5 }
  0x6b   :  { %v417_v52 = vrot.slane %v416_v39, 2  ;;  %v438_v54 = vrot.slane %v437_v53, 4 }
  0x6c   :  { %v391_v17 = vsub.f32 %v389_v22, %v1415_v24 }
  0x6d   :  { %v418_v51 = vadd.f32 %v417_v52, %v416_v39  ;;  %v439_v13 = vadd.f32 %v438_v54, %v437_v53  ;;  %v2022_v39 = vmov 0.0  }
  0x6e   :  { %v393_v18 = vmul.f32 %v391_v17, %v391_v17  ;;  %v234_v7 = vsel %vm233_vm9, 1.0, %v2022_v39  ;;  %v1643_v26 = vsel %vm573_vm14, 1.0, %v2022_v39 }
  0x6f   :  { %v419_v11 = vrot.slane %v418_v51, 1  ;;  %v440_v47 = vrot.slane %v439_v13, 2  ;;  %v288_v52 = vsel %vm287_vm10, 2.0, %v234_v7 }
  0x70   :  { %v1614_v60 = vadd.f32 %v393_v18, %v392_v41  ;;  %v342_v54 = vsel %vm341_vm11, 3.0, %v288_v52 }
  0x71   :  { %v420_v28 = vadd.f32 %v419_v11, %v418_v51  ;;  %v441_v3 = vadd.f32 %v440_v47, %v439_v13 }
  0x72   :  { %2021 = vst [vmem:[#allocation24_spill] sm:$0xff] %v1614_v60  ;;  %vm395_vm12 = vcmp.lt.f32.partialorder %v1614_v60, %v343_v33 }
  0x73   :  { %v444_v30 = vsub.f32 %v420_v28, %v1410_v19  ;;  %v442_v45 = vrot.slane %v441_v3, 1  ;;  %v1629_v17 = vsel %vm395_vm12, %v1614_v60, %v343_v33  ;;  %v396_v41 = vsel %vm395_vm12, 4.0, %v342_v54  ;;  %vm572_vm12 = vmand %vm74_vm3, %vm32_vm8 }
  0x74   :  { %v2024_v28 = vunpack.c.l.bf16 %v1140_v50  ;;  %v2026_v33 = vunpack.c.l.bf16 %v1229_v23  ;;  %v2028_v54 = vunpack.c.l.bf16 %v1494_v49 }
  0x75   :  { %v443_v53 = vadd.f32 %v442_v45, %v441_v3  ;;  %v446_v51 = vmul.f32 %v444_v30, %v444_v30  ;;  %v2025_v3 = vunpack.c.l.bf16 %v1192_v9 }
  0x77   :  { %v445_v22 = vsub.f32 %v443_v53, %v1415_v24  ;;  %v2027_v53 = vunpack.c.l.bf16 %v1269_v58 }
  0x79   :  { %v447_v19 = vmul.f32 %v445_v22, %v445_v22 }
  0x7b   :  { %v1631_v11 = vadd.f32 %v447_v19, %v446_v51 }
  0x7d   :  { %vm449_vm15 = vcmp.lt.f32.partialorder %v1631_v11, %v1629_v17 }
  0x7e   :  { %v1640_v24 = vsel %vm449_vm15, 5.0, %v396_v41 }
  0x7f   :  { %2023 = vst [vmem:[#allocation25_spill] sm:$0xff] %v1640_v24  ;;  %vm602_vm0 = vcmp.eq.f32.partialorder %v1640_v24, 0.0  ;;  %vm605_vm2 = vcmp.eq.f32.partialorder %v1640_v24, 1.0  ;;  %vm608_vm4 = vcmp.eq.f32.partialorder %v1640_v24, 2.0  ;;  %vm611_vm5 = vcmp.eq.f32.partialorder %v1640_v24, 3.0 }
  0x80   :  { %v1650_v31 = vsel %vm602_vm0, 1.0, %v2022_v39  ;;  %v1653_v13 = vsel %vm605_vm2, 1.0, %v2022_v39  ;;  %v1656_v5 = vsel %vm608_vm4, 1.0, %v2022_v39  ;;  %v1659_v18 = vsel %vm611_vm5, 1.0, %v2022_v39 }
  0x81   :  { %vm614_vm6 = vcmp.eq.f32.partialorder %v1640_v24, 4.0  ;;  %vm617_vm7 = vcmp.eq.f32.partialorder %v1640_v24, 5.0  ;;  %v719_v47 = vmul.f32 %v2024_v28, %v1650_v31  ;;  %v727_v30 = vmul.f32 %v2025_v3, %v1653_v13 }
  0x82   :  { %v1670_v7 = vsel %vm614_vm6, 1.0, %v2022_v39  ;;  %v1673_v45 = vsel %vm617_vm7, 1.0, %v2022_v39  ;;  %v735_v52 = vmul.f32 %v2026_v33, %v1656_v5  ;;  %v743_v22 = vmul.f32 %v2027_v53, %v1659_v18 }
  0x83   :  { %v731_v51 = vadd.f32 %v727_v30, %v719_v47  ;;  %v751_v19 = vmul.f32 %v2028_v54, %v1670_v7  ;;  %v759_v41 = vmul.f32 %v980_v1, %v1673_v45  ;;  %v2029_v28 = vunpack.c.l.bf16 %v1114_v43 }
  0x84   :  { %v2030_v33 = vunpack.c.l.bf16 %v1173_v63  ;;  %v2031_v53 = vunpack.c.l.bf16 %v1210_v16  ;;  %v2032_v30 = vunpack.c.l.bf16 %v1247_v38  ;;  %v652_v1 = vmul.f32 %v2033_v48, %v1670_v7 }
  0x85   :  { %v620_v3 = vmul.f32 %v2029_v28, %v1650_v31  ;;  %v739_v60 = vadd.f32 %v735_v52, %v731_v51  ;;  %v2034_v28 = vunpack.c.l.bf16 %v1519_v61  ;;  %v2038_v48 = vunpack.c.l.bf16 %v1256_v10 }
  0x86   :  { %v628_v34 = vmul.f32 %v2030_v33, %v1653_v13  ;;  %v636_v47 = vmul.f32 %v2031_v53, %v1656_v5  ;;  %v644_v54 = vmul.f32 %v2032_v30, %v1659_v18  ;;  %v622_v33 = vmul.f32 %v1650_v31, %v2035_v56 }
  0x87   :  { %v660_v37 = vmul.f32 %v2034_v28, %v1673_v45  ;;  %v630_v53 = vmul.f32 %v1653_v13, %v2036_v29  ;;  %v2037_v30 = vunpack.c.l.bf16 %v1219_v21  ;;  %v646_v52 = vmul.f32 %v1659_v18, %v2038_v48 }
  0x88   :  { %v632_v4 = vadd.f32 %v628_v34, %v620_v3  ;;  %v2039_v51 = vunpack.c.l.bf16 %v1464_v59  ;;  %v747_v55 = vadd.f32 %v743_v22, %v739_v60  ;;  %v2040_v56 = vunpack.c.l.bf16 %v1535_v35 }
  0x89   :  { %v638_v24 = vmul.f32 %v1656_v5, %v2037_v30  ;;  %v634_v0 = vadd.f32 %v630_v53, %v622_v33  ;;  %v2041_v29 = vunpack.c.h.bf16 %v1140_v50  ;;  %v2042_v10 = vunpack.c.h.bf16 %v1192_v9 }
  0x8a   :  { %v654_v28 = vmul.f32 %v1670_v7, %v2039_v51  ;;  %v662_v2 = vmul.f32 %v1673_v45, %v2040_v56  ;;  %v640_v34 = vadd.f32 %v636_v47, %v632_v4  ;;  %v2043_v59 = vunpack.c.h.bf16 %v1229_v23 }
  0x8b   :  { %v720_v21 = vmul.f32 %v2041_v29, %v1650_v31  ;;  %v728_v3 = vmul.f32 %v2042_v10, %v1653_v13  ;;  %v2044_v60 = vunpack.c.h.bf16 %v1269_v58  ;;  %v755_v35 = vadd.f32 %v751_v19, %v747_v55 }
  0x8c   :  { %v736_v30 = vmul.f32 %v2043_v59, %v1656_v5  ;;  %v642_v33 = vadd.f32 %v638_v24, %v634_v0  ;;  %v2045_v53 = vunpack.c.h.bf16 %v1494_v49  ;;  %v2046_v4 = vunpack.c.h.bf16 %v1562_v8 }
  0x8d   :  { %v744_v22 = vmul.f32 %v2044_v60, %v1659_v18  ;;  %v648_v9 = vadd.f32 %v644_v54, %v640_v34  ;;  %v732_v48 = vadd.f32 %v728_v3, %v720_v21  ;;  %v2047_v23 = vunpack.c.h.bf16 %v1114_v43 }
  0x8e   :  { %v752_v50 = vmul.f32 %v2045_v53, %v1670_v7  ;;  %v760_v47 = vmul.f32 %v2046_v4, %v1673_v45  ;;  %v2048_v58 = vunpack.c.h.bf16 %v1173_v63  ;;  %v763_v24 = vadd.f32 %v759_v41, %v755_v35 }
  0x8f   :  { %v621_v51 = vmul.f32 %v2047_v23, %v1650_v31  ;;  %v650_v19 = vadd.f32 %v646_v52, %v642_v33  ;;  %v2049_v49 = vunpack.c.h.bf16 %v1210_v16  ;;  %v2050_v8 = vunpack.c.h.bf16 %v1247_v38 }
  0x90   :  { %v629_v0 = vmul.f32 %v2048_v58, %v1653_v13  ;;  %v656_v56 = vadd.f32 %v652_v1, %v648_v9  ;;  %v740_v29 = vadd.f32 %v736_v30, %v732_v48  ;;  %v2051_v43 = vunpack.c.h.bf16 %v1452_v6 }
  0x91   :  { %v637_v55 = vmul.f32 %v2049_v49, %v1656_v5  ;;  %v645_v54 = vmul.f32 %v2050_v8, %v1659_v18  ;;  %v2052_v63 = vunpack.c.l.bf16 %v1109_v42  ;;  %v658_v41 = vadd.f32 %v654_v28, %v650_v19 }
  0x92   :  { %v633_v21 = vadd.f32 %v629_v0, %v621_v51  ;;  %v653_v34 = vmul.f32 %v2051_v43, %v1670_v7  ;;  %v2053_v52 = vunpack.c.h.bf16 %v1519_v61  ;;  %v2054_v3 = vunpack.c.l.bf16 %v1159_v57 }
  0x93   :  { %v767_v10 = vsub.f32 %v763_v24, %v2052_v63  ;;  %v664_v59 = vadd.f32 %v660_v37, %v656_v56  ;;  %v748_v1 = vadd.f32 %v744_v22, %v740_v29  ;;  %v2055_v60 = vunpack.c.l.bf16 %v1200_v14 }
  0x94   :  { %v661_v16 = vmul.f32 %v2053_v52, %v1673_v45  ;;  %v721_v38 = vmul.f32 %v1650_v31, %v2054_v3  ;;  %v641_v30 = vadd.f32 %v637_v55, %v633_v21  ;;  %v666_v53 = vadd.f32 %v662_v2, %v658_v41 }
  0x95   :  { %v729_v6 = vmul.f32 %v1653_v13, %v2055_v60  ;;  %v771_v35 = vand.u32 2147483647, %v767_v10  ;;  %v779_v33 = vmul.f32 0.5, %v767_v10  ;;  %v2056_v28 = vunpack.c.l.bf16 %v1237_v32 }
  0x96   :  { %v2057_v61 = vunpack.c.l.bf16 %v1104_v40  ;;  %v756_v57 = vadd.f32 %v752_v50, %v748_v1  ;;  %v649_v48 = vadd.f32 %v645_v54, %v641_v30  ;;  %v2058_v14 = vunpack.c.l.bf16 %v1119_v44 }
  0x97   :  { %v737_v4 = vmul.f32 %v1656_v5, %v2056_v28  ;;  %v733_v23 = vadd.f32 %v729_v6, %v721_v38  ;;  %vm775_vm9 = vcmp.lt.f32.partialorder %v771_v35, 1.0  ;;  %v783_v37 = vmul.f32 %v779_v33, %v767_v10 }
  0x98   :  { %v668_v9 = vsub.f32 %v664_v59, %v2057_v61  ;;  %v922_v22 = vadd.f32 -0.5, %v771_v35  ;;  %v670_v51 = vsub.f32 %v666_v53, %v2058_v14  ;;  %v764_v24 = vadd.f32 %v760_v47, %v756_v57 }
  0x99   :  { %v657_v2 = vadd.f32 %v653_v34, %v649_v48  ;;  %v741_v55 = vadd.f32 %v737_v4, %v733_v23  ;;  %v2059_v44 = vunpack.c.h.bf16 %v1109_v42  ;;  %v2060_v34 = vunpack.c.l.bf16 %v1274_v46 }
  0x9a   :  { %v672_v58 = vand.u32 2147483647, %v668_v9  ;;  %v680_v0 = vmul.f32 0.5, %v668_v9  ;;  %v791_v19 = vsel %vm775_vm9, %v783_v37, %v922_v22  ;;  %v674_v32 = vand.u32 2147483647, %v670_v51 }
  0x9b   :  { %v682_v49 = vmul.f32 0.5, %v670_v51  ;;  %v795_v8 = vmul.f32 %v1326_v36, %v791_v19  ;;  %v768_v47 = vsub.f32 %v764_v24, %v2059_v44  ;;  %v665_v43 = vadd.f32 %v661_v16, %v657_v2  ;;  %v2070_v24 = vld [vmem:[#allocation19_spill] sm:$0xff] }
  0x9c   :  { %vm676_vm10 = vcmp.lt.f32.partialorder %v672_v58, 1.0  ;;  %v684_v50 = vmul.f32 %v680_v0, %v668_v9  ;;  %v918_v54 = vadd.f32 -0.5, %v672_v58  ;;  %vm678_vm11 = vcmp.lt.f32.partialorder %v674_v32, 1.0  ;;  %v2066_v9 = vld [vmem:[#allocation13_spill] sm:$0xff] }
  0x9d   :  { %v686_v56 = vmul.f32 %v682_v49, %v670_v51  ;;  %v920_v29 = vadd.f32 -0.5, %v674_v32  ;;  %799 = vadd.xlane.f32.xlu1 %v795_v8  ;;  %v745_v63 = vmul.f32 %v1659_v18, %v2060_v34  ;;  %v2061_v10 = vunpack.c.l.bf16 %v1502_v27  ;;  %v2068_v51 = vld [vmem:[#allocation15_spill] sm:$0xff]  ;;  %v2072_v32 = vld [vmem:[#allocation10_spill] sm:$0xff] }
  0x9e   :  { %v692_v21 = vsel %vm676_vm10, %v684_v50, %v918_v54  ;;  %v772_v3 = vand.u32 2147483647, %v768_v47  ;;  %v780_v38 = vmul.f32 0.5, %v768_v47  ;;  %v1791_v42 = vsel %vm572_vm12, 1.0, %v2022_v39  ;;  %v2074_v8 = vld [vmem:[#allocation11_spill] sm:$0xff] }
  0x9f   :  { %v753_v41 = vmul.f32 %v1670_v7, %v2061_v10  ;;  %v696_v52 = vmul.f32 %v1326_v36, %v692_v21  ;;  %v694_v25 = vsel %vm678_vm11, %v686_v56, %v920_v29  ;;  %v2062_v16 = vunpack.c.h.bf16 %v1104_v40  ;;  %v2076_v29 = vld [vmem:[#allocation8_spill] sm:$0xff]  ;;  %v2080_v10 = vld [vmem:[#allocation14_spill] sm:$0xff] }
  0xa0   :  { %v698_v59 = vmul.f32 %v1643_v26, %v694_v25  ;;  %v749_v46 = vadd.f32 %v745_v63, %v741_v55  ;;  %vm776_vm13 = vcmp.lt.f32.partialorder %v772_v3, 1.0  ;;  %v784_v30 = vmul.f32 %v780_v38, %v768_v47  ;;  %v2078_v21 = vld [vmem:[#allocation12_spill] sm:$0xff] }
  0xa1   :  { %v669_v1 = vsub.f32 %v665_v43, %v2062_v16  ;;  %700 = vadd.xlane.f32.xlu0 %v696_v52  ;;  %v923_v27 = vadd.f32 -0.5, %v772_v3  ;;  %v2063_v60 = vunpack.c.l.bf16 %v1567_v12  ;;  %v2064_v53 = vunpack.c.l.bf16 %v1168_v62 }
  0xa2   :  { %704 = vadd.xlane.f32.xlu2 %v698_v59  ;;  %v757_v33 = vadd.f32 %v753_v41, %v749_v46  ;;  %v2065_v40 = vunpack.c.l.bf16 %v1205_v15  ;;  %v2067_v57 = vunpack.c.l.bf16 %v2066_v9  ;;  %v2069_v62 = vunpack.c.l.bf16 %v2068_v51 }
  0xa3   :  { %v761_v36 = vmul.f32 %v1673_v45, %v2063_v60  ;;  %v673_v6 = vand.u32 2147483647, %v669_v1  ;;  %v681_v35 = vmul.f32 0.5, %v669_v1  ;;  %v722_v28 = vmul.f32 %v1650_v31, %v2064_v53  ;;  %v2089_v53 = vld [vmem:[#allocation25_spill] sm:$0xff] }
  0xa4   :  { %v792_v4 = vsel %vm776_vm13, %v784_v30, %v923_v27  ;;  %v730_v61 = vmul.f32 %v1653_v13, %v2065_v40  ;;  %v738_v48 = vmul.f32 %v1656_v5, %v2067_v57  ;;  %v746_v58 = vmul.f32 %v1659_v18, %v2069_v62  ;;  %v2086_v30 = vld [vmem:[#allocation22_spill] sm:$0xff] }
  0xa5   :  { %v796_v12 = vmul.f32 %v1791_v42, %v792_v4  ;;  %vm677_vm14 = vcmp.lt.f32.partialorder %v673_v6, 1.0  ;;  %v685_v23 = vmul.f32 %v681_v35, %v669_v1  ;;  %v919_v37 = vadd.f32 -0.5, %v673_v6  ;;  %v2088_v35 = vld [vmem:[#allocation6_spill] sm:$0xff] }
  0xa6   :  { %v765_v22 = vadd.f32 %v761_v36, %v757_v33  ;;  %v734_v14 = vadd.f32 %v730_v61, %v722_v28  ;;  %v1816_v15 = vsel %vm449_vm15, %v1631_v11, %v1629_v17  ;;  %v2071_v2 = vunpack.c.l.bf16 %v2070_v24  ;;  %v2090_v28 = vld [vmem:[#allocation5_spill] sm:$0xff] }
  0xa7   :  { %801 = vadd.xlane.f32.xlu1 %v796_v12  ;;  %v693_v0 = vsel %vm677_vm14, %v685_v23, %v919_v37  ;;  %v2073_v49 = vunpack.c.l.bf16 %v2072_v32  ;;  %v2075_v50 = vunpack.c.l.bf16 %v2074_v8  ;;  %v2077_v44 = vunpack.c.l.bf16 %v2076_v29  ;;  %v2092_v12 = vld [vmem:[#allocation9_spill] sm:$0xff] }
  0xa8   :  { %v754_v19 = vmul.f32 %v1670_v7, %v2071_v2  ;;  %v697_v56 = vmul.f32 %v1791_v42, %v693_v0  ;;  %v742_v47 = vadd.f32 %v738_v48, %v734_v14  ;;  %v2079_v43 = vunpack.c.l.bf16 %v2078_v21 }
  0xa9   :  { %v623_v55 = vmul.f32 %v1650_v31, %v2073_v49  ;;  %v631_v54 = vmul.f32 %v1653_v13, %v2075_v50  ;;  %v769_v17 = vsub.f32 %v765_v22, %v2077_v44  ;;  %v2081_v41 = vunpack.c.l.bf16 %v2080_v10  ;;  %v2082_v31 = vld [vmem:[#allocation17_spill] sm:$0xff]  ;;  %v2084_v13 = vld [vmem:[#allocation20_spill] sm:$0xff] }
  0xaa   :  { %v639_v34 = vmul.f32 %v1656_v5, %v2079_v43  ;;  %v2083_v25 = vunpack.c.l.bf16 %v2082_v31  ;;  %v2085_v38 = vunpack.c.l.bf16 %v2084_v13  ;;  %702 = vadd.xlane.f32.xlu0 %v697_v56  ;;  %v750_v46 = vadd.f32 %v746_v58, %v742_v47 }
  0xab   :  { %v635_v63 = vadd.f32 %v631_v54, %v623_v55  ;;  %v647_v52 = vmul.f32 %v1659_v18, %v2081_v41  ;;  %v773_v16 = vand.u32 2147483647, %v769_v17  ;;  %v781_v1 = vmul.f32 0.5, %v769_v17 }
  0xac   :  { %v655_v3 = vmul.f32 %v1670_v7, %v2083_v25  ;;  %v663_v59 = vmul.f32 %v1673_v45, %v2085_v38  ;;  %v2087_v27 = vunpack.c.l.bf16 %v2086_v30  ;;  %1008 = vrsqrt.f32 %v1816_v15  ;;  %v18_v7 = vld [vmem:[%s1917_s0] sm:$0x3f]  ;;  %s1038_s0 = smov [#allocation2]  }
  0xad   :  { %v643_v60 = vadd.f32 %v639_v34, %v635_v63  ;;  %vm777_vm15 = vcmp.lt.f32.partialorder %v773_v16, 1.0  ;;  %v785_v18 = vmul.f32 %v781_v1, %v769_v17  ;;  %v924_v36 = vadd.f32 -0.5, %v773_v16  ;;  %s838_s17 = sshll.u32 %s1038_s0, 4  ;;  %s839_s17 = int_to_ptr.vmem [resolvable:$true] %s838_s17 }
  0xae   :  { %v762_v5 = vmul.f32 %v1673_v45, %v2087_v27  ;;  %v758_v6 = vadd.f32 %v754_v19, %v750_v46  ;;  %vm34_vm0 = vcmp.gt.f32.partialorder %v2088_v35, 0.5  ;;  %v2091_v4 = vcvt.s32.f32 %v2090_v28  ;;  %v2094_v19 = vld [vmem:[#allocation7_spill] sm:$0xff] }
  0xaf   :  { %v651_v33 = vadd.f32 %v647_v52, %v643_v60  ;;  %v793_v40 = vsel %vm777_vm15, %v785_v18, %v924_v36  ;;  %vm574_vm4 = vmand %vm74_vm3, %vm34_vm0  ;;  %v2093_v23 = vunpack.c.l.bf16 %v2092_v12  ;;  %v2095_v32 = vunpack.c.l.bf16 %v2094_v19  ;;  %v2098_v36 = vld [vmem:[#allocation16_spill] sm:$0xff] }
  0xb0   :  { %vm468_vm2 = vcmp.eq.f32.partialorder %v2091_v4, %v2089_v53  ;;  %v766_v45 = vadd.f32 %v762_v5, %v758_v6  ;;  %v797_v9 = vmul.f32 %v1643_v26, %v793_v40  ;;  %v911_v2 = vsel %vm574_vm4, 1.0, %v2022_v39  ;;  %v2099_v6 = vld [vmem:[#allocation18_spill] sm:$0xff] }
  0xb1   :  { %v901_v61 = vsel %vm468_vm2, 1.0, %v2022_v39  ;;  %v659_v57 = vadd.f32 %v655_v3, %v651_v33  ;;  %v589_v17 = vsel %vm63_vm1, %v911_v2, 0.0  ;;  %vm459_vm7 = vcmp.eq.f32.partialorder %v1816_v15, inf  ;;  %v2102_v33 = vld [vmem:[#allocation24_spill] sm:$0xff] }
  0xb2   :  { %v471_v48 = vmul.f32 %v901_v61, %v18_v7  ;;  %v770_v37 = vsub.f32 %v766_v45, %v2093_v23  ;;  %v1009_v22 = vpop.eup %1008  ;;  %803 = vadd.xlane.f32.xlu2 %v797_v9  ;;  %v462_v13 = vand.u32 2147483648, %v1816_v15  ;;  %vm461_vm8 = vcmp.eq.f32.partialorder %v1816_v15, 0.0 }
  0xb3   :  { %v667_v14 = vadd.f32 %v663_v59, %v659_v57  ;;  %v453_v0 = vmul.f32 %v1009_v22, %v1816_v15 }
  0xb4   :  { %v472_v51 = vsel %vm63_vm1, %v471_v48, 0.0  ;;  %v774_v62 = vand.u32 2147483647, %v770_v37  ;;  %v782_v58 = vmul.f32 0.5, %v770_v37 }
  0xb5   :  { %v473_v24 = vrot.slane %v472_v51, 4  ;;  %v671_v49 = vsub.f32 %v667_v14, %v2095_v32  ;;  %v454_v50 = vmul.f32 %v1009_v22, %v453_v0 }
  0xb6   :  { %vm778_vm5 = vcmp.lt.f32.partialorder %v774_v62, 1.0  ;;  %v786_v55 = vmul.f32 %v782_v58, %v770_v37  ;;  %v925_v8 = vadd.f32 -0.5, %v774_v62 }
  0xb7   :  { %v675_v54 = vand.u32 2147483647, %v671_v49  ;;  %v683_v56 = vmul.f32 0.5, %v671_v49  ;;  %v474_v29 = vadd.f32 %v473_v24, %v472_v51  ;;  %v455_v47 = vmul.f32 0.5, %v454_v50 }
  0xb8   :  { %v794_v44 = vsel %vm778_vm5, %v786_v55, %v925_v8 }
  0xb9   :  { %v798_v21 = vmul.f32 %v911_v2, %v794_v44  ;;  %vm679_vm6 = vcmp.lt.f32.partialorder %v675_v54, 1.0  ;;  %v687_v43 = vmul.f32 %v683_v56, %v671_v49  ;;  %v921_v34 = vadd.f32 -0.5, %v675_v54 }
  0xba   :  { %v456_v63 = vsub.f32 1.5, %v455_v47  ;;  %v475_v10 = vrot.slane %v474_v29, 2  ;;  %590 = vadd.xlane.f32.xlu2 %v589_v17  ;;  %v584_v17 = vpop.xlane.xlu2 %583 }
  0xbb   :  { %v805_v41 = vsel %vm63_vm1, %v798_v21, 0.0  ;;  %v695_v52 = vsel %vm679_vm6, %v687_v43, %v921_v34 }
  0xbc   :  { %806 = vadd.xlane.f32.xlu1 %v805_v41  ;;  %v699_v31 = vmul.f32 %v911_v2, %v695_v52  ;;  %v457_v25 = vmul.f32 %v1009_v22, %v456_v63  ;;  %v476_v3 = vadd.f32 %v475_v10, %v474_v29 }
  0xbe   :  { %v706_v38 = vsel %vm63_vm1, %v699_v31, 0.0  ;;  %v458_v59 = vmul.f32 %v457_v25, %v1816_v15  ;;  %v477_v16 = vrot.slane %v476_v3, 1 }
  0xbf   :  { %707 = vadd.xlane.f32.xlu0 %v706_v38 }
  0xc0   :  { %v460_v1 = vsel %vm459_vm7, %v1816_v15, %v458_v59  ;;  %v478_v46 = vadd.f32 %v477_v16, %v476_v3  ;;  %v2100_v15 = vld [vmem:[#allocation21_spill] sm:$0xff] }
  0xc1   :  { %v463_v30 = vsel %vm461_vm8, %v462_v13, %v460_v1 }
  0xc2   :  { %v464_v27 = vadd.f32 0.2, %v463_v30  ;;  %vm466_vm9 = vcmp.lt.f32.partialorder %v463_v30, 2.0  ;;  %v481_v5 = vsub.f32 %v478_v46, %v18_v7  ;;  %v2101_v7 = vld [vmem:[#allocation23_spill] sm:$0xff] }
  0xc3   :  { %vm1875_vm10 = vmand %vm74_vm3, %vm466_vm9 }
  0xc4   :  { %587 = vadd.xlane.f32.xlu1 %v1643_v26  ;;  %v465_v60 = vmul.f32 %v464_v27, %v464_v27  ;;  %vm482_vm14 = vcmp.lt.f32.partialorder %v481_v5, 0.2  ;;  %v486_v26 = vsub.f32 0.2, %v481_v5 }
  0xc6   :  { %vm479_vm11 = vcmp.gt.f32.partialorder %v2098_v36, %v465_v60  ;;  %vm490_vm12 = vcmp.gt.f32.partialorder %v2099_v6, %v465_v60  ;;  %vm504_vm0 = vcmp.gt.f32.partialorder %v2100_v15, %v465_v60  ;;  %vm518_vm4 = vcmp.gt.f32.partialorder %v2101_v7, %v465_v60 }
  0xc7   :  { %585 = vadd.xlane.f32.xlu0 %v1791_v42  ;;  %vm480_vm13 = vmand %vm1875_vm10, %vm479_vm11  ;;  %vm532_vm7 = vcmp.gt.f32.partialorder %v2102_v33, %v465_v60  ;;  %vm546_vm9 = vcmp.gt.f32.partialorder %v1631_v11, %v465_v60 }
  0xc8   :  { %vm483_vm15 = vmand %vm480_vm13, %vm482_vm14 }
  0xc9   :  { %v902_v20 = vsel %vm483_vm15, 1.0, %v2022_v39  ;;  %vm491_vm3 = vmand %vm1875_vm10, %vm490_vm12 }
  0xca   :  { %vm492_vm2 = vmand %vm491_vm3, %vm482_vm14  ;;  %v487_v53 = vmul.f32 %v902_v20, %v486_v26  ;;  %vm560_vm3 = vcmask 1040384  }
  0xcb   :  { %v903_v42 = vsel %vm492_vm2, 1.0, %v2022_v39  ;;  %vm505_vm5 = vmand %vm1875_vm10, %vm504_vm0 }
  0xcc   :  { %v501_v35 = vrot.slane %v903_v42, 1  ;;  %vm506_vm6 = vmand %vm505_vm5, %vm482_vm14  ;;  %v495_v28 = vmul.f32 %v903_v42, %v486_v26 }
  0xcd   :  { %v904_v4 = vsel %vm506_vm6, 1.0, %v2022_v39  ;;  %vm519_vm8 = vmand %vm1875_vm10, %vm518_vm4 }
  0xce   :  { %v503_v40 = vadd.f32 %v902_v20, %v501_v35  ;;  %v515_v45 = vrot.slane %v904_v4, 2  ;;  %vm520_vm11 = vmand %vm519_vm8, %vm482_vm14  ;;  %v497_v61 = vrot.slane %v495_v28, 1  ;;  %v509_v9 = vmul.f32 %v904_v4, %v486_v26 }
  0xcf   :  { %v905_v57 = vsel %vm520_vm11, 1.0, %v2022_v39  ;;  %vm533_vm12 = vmand %vm1875_vm10, %vm532_vm7 }
  0xd0   :  { %v517_v48 = vadd.f32 %v515_v45, %v503_v40  ;;  %v529_v12 = vrot.slane %v905_v57, 3  ;;  %vm534_vm13 = vmand %vm533_vm12, %vm482_vm14  ;;  %v499_v23 = vadd.f32 %v497_v61, %v487_v53  ;;  %v511_v37 = vrot.slane %v509_v9, 2 }
  0xd1   :  { %v906_v22 = vsel %vm534_vm13, 1.0, %v2022_v39  ;;  %vm547_vm15 = vmand %vm1875_vm10, %vm546_vm9  ;;  %v523_v11 = vmul.f32 %v905_v57, %v486_v26  ;;  %v2103_v61 = vlaneseq }
  0xd2   :  { %v531_v14 = vadd.f32 %v529_v12, %v517_v48  ;;  %v543_v51 = vrot.slane %v906_v22, 4  ;;  %vm548_vm0 = vmand %vm547_vm15, %vm482_vm14  ;;  %v513_v62 = vadd.f32 %v511_v37, %v499_v23  ;;  %v537_v58 = vmul.f32 %v906_v22, %v486_v26 }
  0xd3   :  { %v907_v0 = vsel %vm548_vm0, 1.0, %v2022_v39  ;;  %v525_v24 = vrot.slane %v523_v11, 3  ;;  %v820_v9 = vand.u32 127, %v2103_v61 }
  0xd4   :  { %v545_v2 = vadd.f32 %v543_v51, %v531_v14  ;;  %v557_v19 = vrot.slane %v907_v0, 5  ;;  %v539_v32 = vrot.slane %v537_v58, 4  ;;  %v551_v49 = vmul.f32 %v907_v0, %v486_v26 }
  0xd5   :  { %v527_v55 = vadd.f32 %v525_v24, %v513_v62  ;;  %vm823_vm10 = vcmp.eq.s32.totalorder %v820_v9, 1  ;;  %vm821_vm14 = vcmp.eq.s32.totalorder %v820_v9, 0  ;;  %vm829_vm2 = vcmp.eq.s32.totalorder %v820_v9, 3 }
  0xd6   :  { %v559_v8 = vadd.f32 %v557_v19, %v545_v2  ;;  %v553_v50 = vrot.slane %v551_v49, 5 }
  0xd7   :  { %v541_v54 = vadd.f32 %v539_v32, %v527_v55 }
  0xd8   :  { %v565_v56 = vsel %vm560_vm3, %v559_v8, 0.0 }
  0xd9   :  { %566 = vadd.xlane.f32.xlu1 %v565_v56  ;;  %v555_v29 = vadd.f32 %v553_v50, %v541_v54 }
  0xdb   :  { %v561_v44 = vsel %vm560_vm3, %v555_v29, 0.0 }
  0xdc   :  { %562 = vadd.xlane.f32.xlu0 %v561_v44 }
 0x110   :  { %v800_v47 = vpop.xlane.xlu1 %799 }
 0x114   :  { %v701_v21 = vpop.xlane.xlu0 %700 }
 0x115   :  { %v705_v43 = vpop.xlane.xlu2 %704 }
 0x11a   :  { %v802_v39 = vpop.xlane.xlu1 %801 }
 0x11b   :  { %v808_v63 = vadd.f32 %v802_v39, %v800_v47 }
 0x11d   :  { %v703_v34 = vpop.xlane.xlu0 %702 }
 0x11e   :  { %v709_v41 = vadd.f32 %v703_v34, %v701_v21 }
 0x120   :  { %v710_v13 = vadd.f32 %v709_v41, %v705_v43 }
 0x125   :  { %v804_v10 = vpop.xlane.xlu2 %803 }
 0x126   :  { %v809_v52 = vadd.f32 %v808_v63, %v804_v10 }
 0x12d   :  { %v591_v5 = vpop.xlane.xlu2 %590 }
 0x12e   :  { %v594_v15 = vsel %vm63_vm1, %v591_v5, 0.0 }
 0x12f   :  { %v807_v31 = vpop.xlane.xlu1 %806 }
 0x130   :  { %v810_v25 = vsel %vm63_vm1, %v807_v31, 0.0 }
 0x131   :  { %v811_v3 = vadd.f32 %v810_v25, %v809_v52 }
 0x132   :  { %v708_v38 = vpop.xlane.xlu0 %707 }
 0x133   :  { %v711_v59 = vsel %vm63_vm1, %v708_v38, 0.0  ;;  %v812_v16 = vrot.slane %v811_v3, 4  ;;  %vm826_vm1 = vcmp.eq.s32.totalorder %v820_v9, 2 }
 0x134   :  { %v712_v1 = vadd.f32 %v711_v59, %v710_v13 }
 0x135   :  { %v813_v30 = vadd.f32 %v812_v16, %v811_v3 }
 0x136   :  { %v713_v46 = vrot.slane %v712_v1, 4 }
 0x137   :  { %v814_v36 = vrot.slane %v813_v30, 2  ;;  %v588_v26 = vpop.xlane.xlu1 %587 }
 0x138   :  { %v714_v27 = vadd.f32 %v713_v46, %v712_v1 }
 0x139   :  { %v815_v42 = vadd.f32 %v814_v36, %v813_v30 }
 0x13a   :  { %v586_v60 = vpop.xlane.xlu0 %585  ;;  %v715_v6 = vrot.slane %v714_v27, 2 }
 0x13b   :  { %v592_v18 = vadd.f32 %v586_v60, %v584_v17  ;;  %v816_v28 = vrot.slane %v815_v42, 1 }
 0x13c   :  { %v716_v35 = vadd.f32 %v715_v6, %v714_v27 }
 0x13d   :  { %v593_v20 = vadd.f32 %v592_v18, %v588_v26  ;;  %v817_v57 = vadd.f32 %v816_v28, %v815_v42 }
 0x13e   :  { %v717_v4 = vrot.slane %v716_v35, 1 }
 0x13f   :  { %v595_v7 = vadd.f32 %v594_v15, %v593_v20 }
 0x140   :  { %v718_v48 = vadd.f32 %v717_v4, %v716_v35 }
 0x141   :  { %v596_v33 = vrot.slane %v595_v7, 4 }
 0x142   :  { %v818_v37 = vadd.f32 %v817_v57, %v718_v48 }
 0x143   :  { %v597_v53 = vadd.f32 %v596_v33, %v595_v7 }
 0x144   :  { %v827_v51 = vsel %vm826_vm1, %v818_v37, 0.0 }
 0x145   :  { %v598_v40 = vrot.slane %v597_v53, 2 }
 0x147   :  { %v599_v45 = vadd.f32 %v598_v40, %v597_v53 }
 0x149   :  { %v600_v12 = vrot.slane %v599_v45, 1 }
 0x14b   :  { %v601_v11 = vadd.f32 %v600_v12, %v599_v45 }
 0x14c   :  { %v567_v23 = vpop.xlane.xlu1 %566 }
 0x14d   :  { %v824_v22 = vsel %vm823_vm10, %v567_v23, 0.0  ;;  %v830_v0 = vsel %vm829_vm2, %v601_v11, 0.0 }
 0x14f   :  { %v563_v14 = vpop.xlane.xlu0 %562 }
 0x150   :  { %v822_v62 = vsel %vm821_vm14, %v563_v14, 0.0 }
 0x151   :  { %v825_v58 = vadd.f32 %v824_v22, %v822_v62 }
 0x153   :  { %v828_v24 = vadd.f32 %v827_v51, %v825_v58 }
 0x155   :  { %v831_v2 = vadd.f32 %v830_v0, %v828_v24 }
 0x157   :  { %832 = vst [vmem:[#allocation2] sm:$0x1] %v831_v2 }
 0x158   :  { %843 = dma.vmem_to_hbm [thread:$0]  %s839_s17, 16, %s841_s20, [#allocation3]  }
 0x159   :  { %1034 = dma.done.wait [#allocation3], 16  }
 0x15a   :  { %1035 = vsyncadd [#allocation3], 4294967280 }
 0x15b   :  { %848 = vsyncpa [#allocation3], 1 }

</bundles_post_ra>
